<compile_context>
chip_gen: v7x
topology: tpu7x:2x2x1
jax: 0.10.0
libtpu: 0.0.40
codegen_flags: <defaults>
</compile_context>

<pallas_src>
import functools
import jax
import jax.numpy as jnp
from jax import lax
from jax.experimental import pallas as pl
from jax.experimental.pallas import tpu as pltpu


def _round_up(v, m):
    return ((v + m - 1) // m) * m


def _pick_t_tile(T, want):
    """Largest divisor of T <= want (no padded time steps); fall back to `want`
    (with padding) only when the best divisor would be pathologically small."""
    want = max(1, min(want, T))
    best = 1
    for d in range(1, want + 1):
        if T % d == 0:
            best = d
    return best if best >= max(1, want // 2) else want


def lstm_kernel(x_ref, wih_ref, whh_ref, b_ref, wlin_ref, blin_ref,
                y_ref, h_sc, c_sc, gx_sc, hs_sc, *, unroll):
    # Shapes (all padded):
    #   x_ref  : (T_TILE, B, D_in)        bf16
    #   wih_ref: (D_in, 4H) bf16   whh_ref: (H, 4H) bf16   b_ref: (1, 4H) f32
    #   wlin_ref: (H, D_out) bf16  blin_ref: (1, D_out) f32
    #   y_ref  : (T_TILE, B, D_out)       f32
    #   h_sc, c_sc: (B, H) f32   gx_sc: (T_TILE*B, 4H) bf16   hs_sc: (T_TILE*B, H) bf16
    t_tile, b_tile, d_in = x_ref.shape
    hp = whh_ref.shape[0]
    acc_dt = jnp.float32

    # Reset the recurrent state at the start of every batch tile's time sweep.
    # (Time must remain the innermost grid axis: scratch carries h/c across it.)
    @pl.when(pl.program_id(1) == 0)
    def _():
        h_sc[...] = jnp.zeros_like(h_sc)
        c_sc[...] = jnp.zeros_like(c_sc)

    # --- Input-to-hidden gates for the whole time tile: ONE big MXU matmul --
    # bf16 operands, f32 accumulation; bias folded in here; result parked in a
    # bf16 VMEM slab (halves slab bytes and per-step gx load bandwidth).
    x2 = x_ref[...].reshape(t_tile * b_tile, d_in)
    gx = jnp.dot(x2, wih_ref[...], preferred_element_type=acc_dt) + b_ref[...]
    gx_sc[...] = gx.astype(gx_sc.dtype)

    # Hoist the recurrent weight load out of the serial loop.
    whh = whh_ref[...]

    # --- Sequential recurrence: h/c live in vregs (fori_loop carry) ---------
    def step(t, carry):
        h, c = carry                                      # f32, register-resident
        off = pl.multiple_of(t * b_tile, b_tile)          # aligned sublane slice
        gates = (gx_sc[pl.ds(off, b_tile), :].astype(acc_dt)
                 + jnp.dot(h.astype(whh.dtype), whh,
                           preferred_element_type=acc_dt))
        # 128-aligned gate slices (Hp is a multiple of 128); gate math in f32.
        i_g = jax.nn.sigmoid(gates[:, 0 * hp:1 * hp])
        f_g = jax.nn.sigmoid(gates[:, 1 * hp:2 * hp])
        g_g = jnp.tanh(gates[:, 2 * hp:3 * hp])
        o_g = jax.nn.sigmoid(gates[:, 3 * hp:4 * hp])

        c_new = f_g * c + i_g * g_g
        h_new = o_g * jnp.tanh(c_new)
        # Off the critical path: park h_t for the deferred output projection.
        hs_sc[pl.ds(off, b_tile), :] = h_new.astype(hs_sc.dtype)
        return (h_new, c_new)

    h_fin, c_fin = lax.fori_loop(0, t_tile, step, (h_sc[...], c_sc[...]),
                                 unroll=unroll)
    # Store state once per tile so it carries to the next time tile.
    h_sc[...] = h_fin
    c_sc[...] = c_fin

    # --- Deferred output projection (nn.Linear) for the whole tile ----------
    y = (jnp.dot(hs_sc[...], wlin_ref[...], preferred_element_type=acc_dt)
         + blin_ref[...])                                  # (T_TILE*B, D_out) f32
    y_ref[...] = y.reshape(t_tile, b_tile, -1).astype(y_ref.dtype)


def lstm_forward(x, w_ih, w_hh, b, w_lin, b_lin, *, t_tile=32,
                 mxu_dtype=jnp.bfloat16):
    """x: (T, B, D_in); weights pre-transposed (in, out); gate order [i|f|g|o]."""
    T, B, D_in = x.shape
    H = w_hh.shape[0]
    D_out = w_lin.shape[1]

    # Padded sizes: 128 lanes, 16 sublane rows (bf16 packing; also covers f32).
    Hp = _round_up(H, 128)
    Bp = _round_up(B, 16)
    Dop = _round_up(D_out, 128)
    t_tile = _pick_t_tile(T, t_tile)
    Tp = _round_up(T, t_tile)

    # Zero-pad each gate block of a (..., 4H) tensor to (..., 4Hp).
    # Zero padding keeps padded H lanes exactly zero through the recurrence.
    def pad_gate_cols(w):
        parts = []
        for k in range(4):
            p = w[..., k * H:(k + 1) * H]
            pad = [(0, 0)] * (w.ndim - 1) + [(0, Hp - H)]
            parts.append(jnp.pad(p, pad))
        return jnp.concatenate(parts, axis=-1)

    w_ih_p = pad_gate_cols(w_ih).astype(mxu_dtype)                   # (D_in, 4Hp)
    w_hh_p = pad_gate_cols(
        jnp.pad(w_hh, ((0, Hp - H), (0, 0)))).astype(mxu_dtype)      # (Hp, 4Hp)
    b_p = pad_gate_cols(b).astype(jnp.float32)                       # (1, 4Hp)
    w_lin_p = jnp.pad(w_lin, ((0, Hp - H),
                              (0, Dop - D_out))).astype(mxu_dtype)   # (Hp, Dop)
    b_lin_p = jnp.pad(b_lin, ((0, 0),
                              (0, Dop - D_out))).astype(jnp.float32)  # (1, Dop)
    x_p = jnp.pad(x, ((0, Tp - T), (0, Bp - B),
                      (0, 0))).astype(mxu_dtype)                     # (Tp, Bp, D_in)

    # Batch tiling: single tile unless there are enough rows to keep both v7x
    # TensorCores busy (>= 16 bf16-packed rows per core).
    b_tile = Bp
    if Bp >= 32 and Bp % 32 == 0:
        b_tile = Bp // 2
    n_b = Bp // b_tile
    n_t = Tp // t_tile

    # Partial unroll: keeps LLO scheduling visibility without vreg blow-up.
    unroll = max(1, min(t_tile, 8))

    # Explicit VMEM budget (clamped to 64 MiB so it is valid on v7x too).
    msz = jnp.dtype(mxu_dtype).itemsize
    wbytes = ((w_ih_p.size + w_hh_p.size + w_lin_p.size) * msz
              + (b_p.size + b_lin_p.size) * 4)
    blk_bytes = (t_tile * b_tile * D_in * msz          # x block
                 + t_tile * b_tile * Dop * 4)          # y block
    scratch_bytes = (2 * b_tile * Hp * 4
                     + t_tile * b_tile * (4 * Hp + Hp) * msz)
    est = 2 * wbytes + 2 * blk_bytes + scratch_bytes   # inputs double-buffered
    vmem_limit = int(min(max(2 * est, 32 * 1024 * 1024), 64 * 1024 * 1024))

    kernel = functools.partial(lstm_kernel, unroll=unroll)

    y_p = pl.pallas_call(
        kernel,
        out_shape=jax.ShapeDtypeStruct((Tp, Bp, Dop), jnp.float32),
        grid_spec=pltpu.PrefetchScalarGridSpec(
            num_scalar_prefetch=0,
            grid=(n_b, n_t),
            in_specs=[
                pl.BlockSpec((t_tile, b_tile, D_in), lambda bi, ti: (ti, bi, 0)),
                # Constant-index weight blocks (not re-fetched across grid steps).
                pl.BlockSpec((D_in, 4 * Hp), lambda bi, ti: (0, 0)),
                pl.BlockSpec((Hp, 4 * Hp), lambda bi, ti: (0, 0)),
                pl.BlockSpec((1, 4 * Hp), lambda bi, ti: (0, 0)),
                pl.BlockSpec((Hp, Dop), lambda bi, ti: (0, 0)),
                pl.BlockSpec((1, Dop), lambda bi, ti: (0, 0)),
            ],
            out_specs=pl.BlockSpec((t_tile, b_tile, Dop),
                                   lambda bi, ti: (ti, bi, 0)),
            scratch_shapes=[
                pltpu.VMEM((b_tile, Hp), jnp.float32),             # h carry-over
                pltpu.VMEM((b_tile, Hp), jnp.float32),             # c carry-over
                pltpu.VMEM((t_tile * b_tile, 4 * Hp), mxu_dtype),  # x-gate slab
                pltpu.VMEM((t_tile * b_tile, Hp), mxu_dtype),      # h history
            ],
        ),
        compiler_params=pltpu.CompilerParams(
            dimension_semantics=("parallel", "arbitrary"),
            vmem_limit_bytes=vmem_limit),
    )(x_p, w_ih_p, w_hh_p, b_p, w_lin_p, b_lin_p)

    # Lane-dense padded store inside the kernel; a fused consumer could take the
    # padded (Tp, Bp, Dop) slab directly and skip this unpad copy.
    return y_p[:T, :B, :D_out]


def lstm_reference(x, w_ih, w_hh, b, w_lin, b_lin):
    """Pure-JAX f32 reference mirroring PyTorch nn.LSTM + nn.Linear."""
    T, B, _ = x.shape
    H = w_hh.shape[0]

    def step(carry, x_t):
        h, c = carry
        gates = x_t @ w_ih + h @ w_hh + b[0]
        i_g = jax.nn.sigmoid(gates[:, 0 * H:1 * H])
        f_g = jax.nn.sigmoid(gates[:, 1 * H:2 * H])
        g_g = jnp.tanh(gates[:, 2 * H:3 * H])
        o_g = jax.nn.sigmoid(gates[:, 3 * H:4 * H])
        c = f_g * c + i_g * g_g
        h = o_g * jnp.tanh(c)
        return (h, c), h

    h0 = jnp.zeros((B, H), jnp.float32)
    c0 = jnp.zeros((B, H), jnp.float32)
    _, hs = lax.scan(step, (h0, c0), x)
    return hs @ w_lin + b_lin[0]


if __name__ == "__main__":
    # Small shapes consistent with the module (orig: input=output=seq=90, H=64).
    T = 8          # number of time steps
    B = 4          # batch
    D_IN = 16      # input feature size (role of `input_size`)
    H = 32         # hidden size
    D_OUT = 16     # output size

    key = jax.random.PRNGKey(0)
    ks = jax.random.split(key, 7)
    bound = 1.0 / jnp.sqrt(H)

    # PyTorch-style uniform(-1/sqrt(H), 1/sqrt(H)) init, pre-transposed.
    w_ih = jax.random.uniform(ks[0], (D_IN, 4 * H), jnp.float32, -bound, bound)
    w_hh = jax.random.uniform(ks[1], (H, 4 * H), jnp.float32, -bound, bound)
    b_ih = jax.random.uniform(ks[2], (4 * H,), jnp.float32, -bound, bound)
    b_hh = jax.random.uniform(ks[3], (4 * H,), jnp.float32, -bound, bound)
    b = (b_ih + b_hh).reshape(1, 4 * H)
    w_lin = jax.random.uniform(ks[4], (H, D_OUT), jnp.float32, -bound, bound)
    b_lin = jax.random.uniform(ks[5], (1, D_OUT), jnp.float32, -bound, bound)

    x = jax.random.normal(ks[6], (T, B, D_IN), jnp.float32)

    y = lstm_forward(x, w_ih, w_hh, b, w_lin, b_lin)
    y = jax.block_until_ready(y)

    y_ref = lstm_reference(x, w_ih, w_hh, b, w_lin, b_lin)
    assert y.shape == (T, B, D_OUT)
    # bf16 MXU operands -> loosened tolerance vs the f32 reference.
    assert jnp.allclose(y, y_ref, atol=3e-2, rtol=3e-2), "mismatch vs reference"

    print("KERNEL_OK")
</pallas_src>

<mosaic_0001>
module attributes {stable_mosaic.version = 11 : i64} {
  func.func @lstm_kernel(%arg0: i32, %arg1: i32, %arg2: memref<8x16x16xbf16, #tpu.memory_space<vmem>>, %arg3: memref<16x512xbf16, #tpu.memory_space<vmem>>, %arg4: memref<128x512xbf16, #tpu.memory_space<vmem>>, %arg5: memref<1x512xf32, #tpu.memory_space<vmem>>, %arg6: memref<128x128xbf16, #tpu.memory_space<vmem>>, %arg7: memref<1x128xf32, #tpu.memory_space<vmem>>, %arg8: memref<8x16x128xf32, #tpu.memory_space<vmem>>, %arg9: memref<16x128xf32, #tpu.memory_space<vmem>>, %arg10: memref<16x128xf32, #tpu.memory_space<vmem>>, %arg11: memref<128x512xbf16, #tpu.memory_space<vmem>>, %arg12: memref<128x128xbf16, #tpu.memory_space<vmem>>) attributes {dimension_semantics = [#tpu.dimension_semantics<parallel>, #tpu.dimension_semantics<arbitrary>], iteration_bounds = array<i64: 1, 1>, scalar_prefetch = 0 : i64, scratch_operands = 4 : i64, tpu.core_type = #tpu.core_type<tc>, window_params = [{transform_indices = @transform_0, window_bounds = array<i64: 8, 16, 16>}, {pipeline_mode = #tpu.pipeline_mode<synchronous>, transform_indices = @transform_1, window_bounds = array<i64: 16, 512>}, {pipeline_mode = #tpu.pipeline_mode<synchronous>, transform_indices = @transform_2, window_bounds = array<i64: 128, 512>}, {pipeline_mode = #tpu.pipeline_mode<synchronous>, transform_indices = @transform_3, window_bounds = array<i64: 1, 512>}, {pipeline_mode = #tpu.pipeline_mode<synchronous>, transform_indices = @transform_4, window_bounds = array<i64: 128, 128>}, {pipeline_mode = #tpu.pipeline_mode<synchronous>, transform_indices = @transform_5, window_bounds = array<i64: 1, 128>}, {transform_indices = @transform_6, window_bounds = array<i64: 8, 16, 128>}]} {
    %c0_i32 = arith.constant 0 : i32
    %0 = arith.cmpi eq, %arg1, %c0_i32 : i32
    %1 = arith.extui %0 : i1 to i32
    %c0_i32_0 = arith.constant 0 : i32
    %2 = arith.cmpi ne, %1, %c0_i32_0 : i32
    scf.if %2 {
      %cst_85 = arith.constant 0.000000e+00 : f32
      %313 = vector.broadcast %cst_85 : f32 to vector<16x128xf32>
      %c0_86 = arith.constant 0 : index
      %c0_87 = arith.constant 0 : index
      %314 = vector.load %arg9[%c0_86, %c0_87] : memref<16x128xf32, #tpu.memory_space<vmem>>, vector<16x128xf32>
      tpu.vector_store %arg9[%c0_86, %c0_87], %313 {strides = array<i32>} : memref<16x128xf32, #tpu.memory_space<vmem>>, vector<16x128xf32>,
      %cst_88 = arith.constant 0.000000e+00 : f32
      %315 = vector.broadcast %cst_88 : f32 to vector<16x128xf32>
      %c0_89 = arith.constant 0 : index
      %c0_90 = arith.constant 0 : index
      %316 = vector.load %arg10[%c0_89, %c0_90] : memref<16x128xf32, #tpu.memory_space<vmem>>, vector<16x128xf32>
      tpu.vector_store %arg10[%c0_89, %c0_90], %315 {strides = array<i32>} : memref<16x128xf32, #tpu.memory_space<vmem>>, vector<16x128xf32>,
    } else {
    }
    %c0 = arith.constant 0 : index
    %c0_1 = arith.constant 0 : index
    %c0_2 = arith.constant 0 : index
    %3 = vector.load %arg2[%c0, %c0_1, %c0_2] : memref<8x16x16xbf16, #tpu.memory_space<vmem>>, vector<8x16x16xbf16>
    %4 = vector.shape_cast %3 : vector<8x16x16xbf16> to vector<128x16xbf16>
    %c0_3 = arith.constant 0 : index
    %c0_4 = arith.constant 0 : index
    %5 = vector.load %arg3[%c0_3, %c0_4] : memref<16x512xbf16, #tpu.memory_space<vmem>>, vector<16x512xbf16>
    %cst = arith.constant dense<0.000000e+00> : vector<128x512xf32>
    %6 = tpu.matmul %4, %5, %cst {dimension_numbers = #tpu.dot_dimension_numbers<[1], [0], [0], [1], [0, 0, 1, 1], [], []>} : vector<128x16xbf16>, vector<16x512xbf16>, vector<128x512xf32> -> vector<128x512xf32>
    %c0_5 = arith.constant 0 : index
    %c0_6 = arith.constant 0 : index
    %7 = vector.load %arg5[%c0_5, %c0_6] : memref<1x512xf32, #tpu.memory_space<vmem>>, vector<1x512xf32>
    %8 = vector.broadcast %7 : vector<1x512xf32> to vector<128x512xf32>
    %9 = arith.addf %6, %8 : vector<128x512xf32>
    %10 = arith.truncf %9 : vector<128x512xf32> to vector<128x512xbf16>
    %c0_7 = arith.constant 0 : index
    %c0_8 = arith.constant 0 : index
    %11 = vector.load %arg11[%c0_7, %c0_8] : memref<128x512xbf16, #tpu.memory_space<vmem>>, vector<128x512xbf16>
    tpu.vector_store %arg11[%c0_7, %c0_8], %10 {strides = array<i32>} : memref<128x512xbf16, #tpu.memory_space<vmem>>, vector<128x512xbf16>,
    %c0_9 = arith.constant 0 : index
    %c0_10 = arith.constant 0 : index
    %12 = vector.load %arg4[%c0_9, %c0_10] : memref<128x512xbf16, #tpu.memory_space<vmem>>, vector<128x512xbf16>
    %c0_11 = arith.constant 0 : index
    %c0_12 = arith.constant 0 : index
    %13 = vector.load %arg9[%c0_11, %c0_12] : memref<16x128xf32, #tpu.memory_space<vmem>>, vector<16x128xf32>
    %c0_13 = arith.constant 0 : index
    %c0_14 = arith.constant 0 : index
    %14 = vector.load %arg10[%c0_13, %c0_14] : memref<16x128xf32, #tpu.memory_space<vmem>>, vector<16x128xf32>
    %c0_i32_15 = arith.constant 0 : i32
    %c16_i32 = arith.constant 16 : i32
    %15 = arith.muli %c0_i32_15, %c16_i32 : i32
    %16 = tpu.assume_multiple %15, 16 : i32
    %17 = arith.index_cast %16 : i32 to index
    %c0_16 = arith.constant 0 : index
    %18 = vector.load %arg11[%17, %c0_16] : memref<128x512xbf16, #tpu.memory_space<vmem>>, vector<16x512xbf16>
    %19 = arith.extf %18 : vector<16x512xbf16> to vector<16x512xf32>
    %20 = arith.truncf %13 : vector<16x128xf32> to vector<16x128xbf16>
    %cst_17 = arith.constant dense<0.000000e+00> : vector<16x512xf32>
    %21 = tpu.matmul %20, %12, %cst_17 {dimension_numbers = #tpu.dot_dimension_numbers<[1], [0], [0], [1], [0, 0, 1, 1], [], []>} : vector<16x128xbf16>, vector<128x512xbf16>, vector<16x512xf32> -> vector<16x512xf32>
    %22 = arith.addf %19, %21 : vector<16x512xf32>
    %23 = vector.extract_strided_slice %22 {offsets = [0, 0], sizes = [16, 128], strides = [1, 1]} : vector<16x512xf32> to vector<16x128xf32>
    %24 = arith.negf %23 : vector<16x128xf32>
    %25 = math.exp %24 : vector<16x128xf32>
    %cst_18 = arith.constant 1.000000e+00 : f32
    %26 = vector.broadcast %cst_18 : f32 to vector<16x128xf32>
    %27 = arith.addf %26, %25 : vector<16x128xf32>
    %28 = arith.divf %26, %27 : vector<16x128xf32>
    %29 = vector.extract_strided_slice %22 {offsets = [0, 128], sizes = [16, 128], strides = [1, 1]} : vector<16x512xf32> to vector<16x128xf32>
    %30 = arith.negf %29 : vector<16x128xf32>
    %31 = math.exp %30 : vector<16x128xf32>
    %cst_19 = arith.constant 1.000000e+00 : f32
    %32 = vector.broadcast %cst_19 : f32 to vector<16x128xf32>
    %33 = arith.addf %32, %31 : vector<16x128xf32>
    %34 = arith.divf %32, %33 : vector<16x128xf32>
    %35 = vector.extract_strided_slice %22 {offsets = [0, 256], sizes = [16, 128], strides = [1, 1]} : vector<16x512xf32> to vector<16x128xf32>
    %36 = math.tanh %35 : vector<16x128xf32>
    %37 = vector.extract_strided_slice %22 {offsets = [0, 384], sizes = [16, 128], strides = [1, 1]} : vector<16x512xf32> to vector<16x128xf32>
    %38 = arith.negf %37 : vector<16x128xf32>
    %39 = math.exp %38 : vector<16x128xf32>
    %cst_20 = arith.constant 1.000000e+00 : f32
    %40 = vector.broadcast %cst_20 : f32 to vector<16x128xf32>
    %41 = arith.addf %40, %39 : vector<16x128xf32>
    %42 = arith.divf %40, %41 : vector<16x128xf32>
    %43 = arith.mulf %34, %14 : vector<16x128xf32>
    %44 = arith.mulf %28, %36 : vector<16x128xf32>
    %45 = arith.addf %43, %44 : vector<16x128xf32>
    %46 = math.tanh %45 : vector<16x128xf32>
    %47 = arith.mulf %42, %46 : vector<16x128xf32>
    %48 = arith.truncf %47 : vector<16x128xf32> to vector<16x128xbf16>
    %49 = arith.index_cast %16 : i32 to index
    %c0_21 = arith.constant 0 : index
    %50 = vector.load %arg12[%49, %c0_21] : memref<128x128xbf16, #tpu.memory_space<vmem>>, vector<16x128xbf16>
    tpu.vector_store %arg12[%49, %c0_21], %48 {strides = array<i32>} : memref<128x128xbf16, #tpu.memory_space<vmem>>, vector<16x128xbf16>,
    %c1_i32 = arith.constant 1 : i32
    %c16_i32_22 = arith.constant 16 : i32
    %51 = arith.muli %c1_i32, %c16_i32_22 : i32
    %52 = tpu.assume_multiple %51, 16 : i32
    %53 = arith.index_cast %52 : i32 to index
    %c0_23 = arith.constant 0 : index
    %54 = vector.load %arg11[%53, %c0_23] : memref<128x512xbf16, #tpu.memory_space<vmem>>, vector<16x512xbf16>
    %55 = arith.extf %54 : vector<16x512xbf16> to vector<16x512xf32>
    %56 = arith.truncf %47 : vector<16x128xf32> to vector<16x128xbf16>
    %cst_24 = arith.constant dense<0.000000e+00> : vector<16x512xf32>
    %57 = tpu.matmul %56, %12, %cst_24 {dimension_numbers = #tpu.dot_dimension_numbers<[1], [0], [0], [1], [0, 0, 1, 1], [], []>} : vector<16x128xbf16>, vector<128x512xbf16>, vector<16x512xf32> -> vector<16x512xf32>
    %58 = arith.addf %55, %57 : vector<16x512xf32>
    %59 = vector.extract_strided_slice %58 {offsets = [0, 0], sizes = [16, 128], strides = [1, 1]} : vector<16x512xf32> to vector<16x128xf32>
    %60 = arith.negf %59 : vector<16x128xf32>
    %61 = math.exp %60 : vector<16x128xf32>
    %cst_25 = arith.constant 1.000000e+00 : f32
    %62 = vector.broadcast %cst_25 : f32 to vector<16x128xf32>
    %63 = arith.addf %62, %61 : vector<16x128xf32>
    %64 = arith.divf %62, %63 : vector<16x128xf32>
    %65 = vector.extract_strided_slice %58 {offsets = [0, 128], sizes = [16, 128], strides = [1, 1]} : vector<16x512xf32> to vector<16x128xf32>
    %66 = arith.negf %65 : vector<16x128xf32>
    %67 = math.exp %66 : vector<16x128xf32>
    %cst_26 = arith.constant 1.000000e+00 : f32
    %68 = vector.broadcast %cst_26 : f32 to vector<16x128xf32>
    %69 = arith.addf %68, %67 : vector<16x128xf32>
    %70 = arith.divf %68, %69 : vector<16x128xf32>
    %71 = vector.extract_strided_slice %58 {offsets = [0, 256], sizes = [16, 128], strides = [1, 1]} : vector<16x512xf32> to vector<16x128xf32>
    %72 = math.tanh %71 : vector<16x128xf32>
    %73 = vector.extract_strided_slice %58 {offsets = [0, 384], sizes = [16, 128], strides = [1, 1]} : vector<16x512xf32> to vector<16x128xf32>
    %74 = arith.negf %73 : vector<16x128xf32>
    %75 = math.exp %74 : vector<16x128xf32>
    %cst_27 = arith.constant 1.000000e+00 : f32
    %76 = vector.broadcast %cst_27 : f32 to vector<16x128xf32>
    %77 = arith.addf %76, %75 : vector<16x128xf32>
    %78 = arith.divf %76, %77 : vector<16x128xf32>
    %79 = arith.mulf %70, %45 : vector<16x128xf32>
    %80 = arith.mulf %64, %72 : vector<16x128xf32>
    %81 = arith.addf %79, %80 : vector<16x128xf32>
    %82 = math.tanh %81 : vector<16x128xf32>
    %83 = arith.mulf %78, %82 : vector<16x128xf32>
    %84 = arith.truncf %83 : vector<16x128xf32> to vector<16x128xbf16>
    %85 = arith.index_cast %52 : i32 to index
    %c0_28 = arith.constant 0 : index
    %86 = vector.load %arg12[%85, %c0_28] : memref<128x128xbf16, #tpu.memory_space<vmem>>, vector<16x128xbf16>
    tpu.vector_store %arg12[%85, %c0_28], %84 {strides = array<i32>} : memref<128x128xbf16, #tpu.memory_space<vmem>>, vector<16x128xbf16>,
    %c2_i32 = arith.constant 2 : i32
    %c16_i32_29 = arith.constant 16 : i32
    %87 = arith.muli %c2_i32, %c16_i32_29 : i32
    %88 = tpu.assume_multiple %87, 16 : i32
    %89 = arith.index_cast %88 : i32 to index
    %c0_30 = arith.constant 0 : index
    %90 = vector.load %arg11[%89, %c0_30] : memref<128x512xbf16, #tpu.memory_space<vmem>>, vector<16x512xbf16>
    %91 = arith.extf %90 : vector<16x512xbf16> to vector<16x512xf32>
    %92 = arith.truncf %83 : vector<16x128xf32> to vector<16x128xbf16>
    %cst_31 = arith.constant dense<0.000000e+00> : vector<16x512xf32>
    %93 = tpu.matmul %92, %12, %cst_31 {dimension_numbers = #tpu.dot_dimension_numbers<[1], [0], [0], [1], [0, 0, 1, 1], [], []>} : vector<16x128xbf16>, vector<128x512xbf16>, vector<16x512xf32> -> vector<16x512xf32>
    %94 = arith.addf %91, %93 : vector<16x512xf32>
    %95 = vector.extract_strided_slice %94 {offsets = [0, 0], sizes = [16, 128], strides = [1, 1]} : vector<16x512xf32> to vector<16x128xf32>
    %96 = arith.negf %95 : vector<16x128xf32>
    %97 = math.exp %96 : vector<16x128xf32>
    %cst_32 = arith.constant 1.000000e+00 : f32
    %98 = vector.broadcast %cst_32 : f32 to vector<16x128xf32>
    %99 = arith.addf %98, %97 : vector<16x128xf32>
    %100 = arith.divf %98, %99 : vector<16x128xf32>
    %101 = vector.extract_strided_slice %94 {offsets = [0, 128], sizes = [16, 128], strides = [1, 1]} : vector<16x512xf32> to vector<16x128xf32>
    %102 = arith.negf %101 : vector<16x128xf32>
    %103 = math.exp %102 : vector<16x128xf32>
    %cst_33 = arith.constant 1.000000e+00 : f32
    %104 = vector.broadcast %cst_33 : f32 to vector<16x128xf32>
    %105 = arith.addf %104, %103 : vector<16x128xf32>
    %106 = arith.divf %104, %105 : vector<16x128xf32>
    %107 = vector.extract_strided_slice %94 {offsets = [0, 256], sizes = [16, 128], strides = [1, 1]} : vector<16x512xf32> to vector<16x128xf32>
    %108 = math.tanh %107 : vector<16x128xf32>
    %109 = vector.extract_strided_slice %94 {offsets = [0, 384], sizes = [16, 128], strides = [1, 1]} : vector<16x512xf32> to vector<16x128xf32>
    %110 = arith.negf %109 : vector<16x128xf32>
    %111 = math.exp %110 : vector<16x128xf32>
    %cst_34 = arith.constant 1.000000e+00 : f32
    %112 = vector.broadcast %cst_34 : f32 to vector<16x128xf32>
    %113 = arith.addf %112, %111 : vector<16x128xf32>
    %114 = arith.divf %112, %113 : vector<16x128xf32>
    %115 = arith.mulf %106, %81 : vector<16x128xf32>
    %116 = arith.mulf %100, %108 : vector<16x128xf32>
    %117 = arith.addf %115, %116 : vector<16x128xf32>
    %118 = math.tanh %117 : vector<16x128xf32>
    %119 = arith.mulf %114, %118 : vector<16x128xf32>
    %120 = arith.truncf %119 : vector<16x128xf32> to vector<16x128xbf16>
    %121 = arith.index_cast %88 : i32 to index
    %c0_35 = arith.constant 0 : index
    %122 = vector.load %arg12[%121, %c0_35] : memref<128x128xbf16, #tpu.memory_space<vmem>>, vector<16x128xbf16>
    tpu.vector_store %arg12[%121, %c0_35], %120 {strides = array<i32>} : memref<128x128xbf16, #tpu.memory_space<vmem>>, vector<16x128xbf16>,
    %c3_i32 = arith.constant 3 : i32
    %c16_i32_36 = arith.constant 16 : i32
    %123 = arith.muli %c3_i32, %c16_i32_36 : i32
    %124 = tpu.assume_multiple %123, 16 : i32
    %125 = arith.index_cast %124 : i32 to index
    %c0_37 = arith.constant 0 : index
    %126 = vector.load %arg11[%125, %c0_37] : memref<128x512xbf16, #tpu.memory_space<vmem>>, vector<16x512xbf16>
    %127 = arith.extf %126 : vector<16x512xbf16> to vector<16x512xf32>
    %128 = arith.truncf %119 : vector<16x128xf32> to vector<16x128xbf16>
    %cst_38 = arith.constant dense<0.000000e+00> : vector<16x512xf32>
    %129 = tpu.matmul %128, %12, %cst_38 {dimension_numbers = #tpu.dot_dimension_numbers<[1], [0], [0], [1], [0, 0, 1, 1], [], []>} : vector<16x128xbf16>, vector<128x512xbf16>, vector<16x512xf32> -> vector<16x512xf32>
    %130 = arith.addf %127, %129 : vector<16x512xf32>
    %131 = vector.extract_strided_slice %130 {offsets = [0, 0], sizes = [16, 128], strides = [1, 1]} : vector<16x512xf32> to vector<16x128xf32>
    %132 = arith.negf %131 : vector<16x128xf32>
    %133 = math.exp %132 : vector<16x128xf32>
    %cst_39 = arith.constant 1.000000e+00 : f32
    %134 = vector.broadcast %cst_39 : f32 to vector<16x128xf32>
    %135 = arith.addf %134, %133 : vector<16x128xf32>
    %136 = arith.divf %134, %135 : vector<16x128xf32>
    %137 = vector.extract_strided_slice %130 {offsets = [0, 128], sizes = [16, 128], strides = [1, 1]} : vector<16x512xf32> to vector<16x128xf32>
    %138 = arith.negf %137 : vector<16x128xf32>
    %139 = math.exp %138 : vector<16x128xf32>
    %cst_40 = arith.constant 1.000000e+00 : f32
    %140 = vector.broadcast %cst_40 : f32 to vector<16x128xf32>
    %141 = arith.addf %140, %139 : vector<16x128xf32>
    %142 = arith.divf %140, %141 : vector<16x128xf32>
    %143 = vector.extract_strided_slice %130 {offsets = [0, 256], sizes = [16, 128], strides = [1, 1]} : vector<16x512xf32> to vector<16x128xf32>
    %144 = math.tanh %143 : vector<16x128xf32>
    %145 = vector.extract_strided_slice %130 {offsets = [0, 384], sizes = [16, 128], strides = [1, 1]} : vector<16x512xf32> to vector<16x128xf32>
    %146 = arith.negf %145 : vector<16x128xf32>
    %147 = math.exp %146 : vector<16x128xf32>
    %cst_41 = arith.constant 1.000000e+00 : f32
    %148 = vector.broadcast %cst_41 : f32 to vector<16x128xf32>
    %149 = arith.addf %148, %147 : vector<16x128xf32>
    %150 = arith.divf %148, %149 : vector<16x128xf32>
    %151 = arith.mulf %142, %117 : vector<16x128xf32>
    %152 = arith.mulf %136, %144 : vector<16x128xf32>
    %153 = arith.addf %151, %152 : vector<16x128xf32>
    %154 = math.tanh %153 : vector<16x128xf32>
    %155 = arith.mulf %150, %154 : vector<16x128xf32>
    %156 = arith.truncf %155 : vector<16x128xf32> to vector<16x128xbf16>
    %157 = arith.index_cast %124 : i32 to index
    %c0_42 = arith.constant 0 : index
    %158 = vector.load %arg12[%157, %c0_42] : memref<128x128xbf16, #tpu.memory_space<vmem>>, vector<16x128xbf16>
    tpu.vector_store %arg12[%157, %c0_42], %156 {strides = array<i32>} : memref<128x128xbf16, #tpu.memory_space<vmem>>, vector<16x128xbf16>,
    %c4_i32 = arith.constant 4 : i32
    %c16_i32_43 = arith.constant 16 : i32
    %159 = arith.muli %c4_i32, %c16_i32_43 : i32
    %160 = tpu.assume_multiple %159, 16 : i32
    %161 = arith.index_cast %160 : i32 to index
    %c0_44 = arith.constant 0 : index
    %162 = vector.load %arg11[%161, %c0_44] : memref<128x512xbf16, #tpu.memory_space<vmem>>, vector<16x512xbf16>
    %163 = arith.extf %162 : vector<16x512xbf16> to vector<16x512xf32>
    %164 = arith.truncf %155 : vector<16x128xf32> to vector<16x128xbf16>
    %cst_45 = arith.constant dense<0.000000e+00> : vector<16x512xf32>
    %165 = tpu.matmul %164, %12, %cst_45 {dimension_numbers = #tpu.dot_dimension_numbers<[1], [0], [0], [1], [0, 0, 1, 1], [], []>} : vector<16x128xbf16>, vector<128x512xbf16>, vector<16x512xf32> -> vector<16x512xf32>
    %166 = arith.addf %163, %165 : vector<16x512xf32>
    %167 = vector.extract_strided_slice %166 {offsets = [0, 0], sizes = [16, 128], strides = [1, 1]} : vector<16x512xf32> to vector<16x128xf32>
    %168 = arith.negf %167 : vector<16x128xf32>
    %169 = math.exp %168 : vector<16x128xf32>
    %cst_46 = arith.constant 1.000000e+00 : f32
    %170 = vector.broadcast %cst_46 : f32 to vector<16x128xf32>
    %171 = arith.addf %170, %169 : vector<16x128xf32>
    %172 = arith.divf %170, %171 : vector<16x128xf32>
    %173 = vector.extract_strided_slice %166 {offsets = [0, 128], sizes = [16, 128], strides = [1, 1]} : vector<16x512xf32> to vector<16x128xf32>
    %174 = arith.negf %173 : vector<16x128xf32>
    %175 = math.exp %174 : vector<16x128xf32>
    %cst_47 = arith.constant 1.000000e+00 : f32
    %176 = vector.broadcast %cst_47 : f32 to vector<16x128xf32>
    %177 = arith.addf %176, %175 : vector<16x128xf32>
    %178 = arith.divf %176, %177 : vector<16x128xf32>
    %179 = vector.extract_strided_slice %166 {offsets = [0, 256], sizes = [16, 128], strides = [1, 1]} : vector<16x512xf32> to vector<16x128xf32>
    %180 = math.tanh %179 : vector<16x128xf32>
    %181 = vector.extract_strided_slice %166 {offsets = [0, 384], sizes = [16, 128], strides = [1, 1]} : vector<16x512xf32> to vector<16x128xf32>
    %182 = arith.negf %181 : vector<16x128xf32>
    %183 = math.exp %182 : vector<16x128xf32>
    %cst_48 = arith.constant 1.000000e+00 : f32
    %184 = vector.broadcast %cst_48 : f32 to vector<16x128xf32>
    %185 = arith.addf %184, %183 : vector<16x128xf32>
    %186 = arith.divf %184, %185 : vector<16x128xf32>
    %187 = arith.mulf %178, %153 : vector<16x128xf32>
    %188 = arith.mulf %172, %180 : vector<16x128xf32>
    %189 = arith.addf %187, %188 : vector<16x128xf32>
    %190 = math.tanh %189 : vector<16x128xf32>
    %191 = arith.mulf %186, %190 : vector<16x128xf32>
    %192 = arith.truncf %191 : vector<16x128xf32> to vector<16x128xbf16>
    %193 = arith.index_cast %160 : i32 to index
    %c0_49 = arith.constant 0 : index
    %194 = vector.load %arg12[%193, %c0_49] : memref<128x128xbf16, #tpu.memory_space<vmem>>, vector<16x128xbf16>
    tpu.vector_store %arg12[%193, %c0_49], %192 {strides = array<i32>} : memref<128x128xbf16, #tpu.memory_space<vmem>>, vector<16x128xbf16>,
    %c5_i32 = arith.constant 5 : i32
    %c16_i32_50 = arith.constant 16 : i32
    %195 = arith.muli %c5_i32, %c16_i32_50 : i32
    %196 = tpu.assume_multiple %195, 16 : i32
    %197 = arith.index_cast %196 : i32 to index
    %c0_51 = arith.constant 0 : index
    %198 = vector.load %arg11[%197, %c0_51] : memref<128x512xbf16, #tpu.memory_space<vmem>>, vector<16x512xbf16>
    %199 = arith.extf %198 : vector<16x512xbf16> to vector<16x512xf32>
    %200 = arith.truncf %191 : vector<16x128xf32> to vector<16x128xbf16>
    %cst_52 = arith.constant dense<0.000000e+00> : vector<16x512xf32>
    %201 = tpu.matmul %200, %12, %cst_52 {dimension_numbers = #tpu.dot_dimension_numbers<[1], [0], [0], [1], [0, 0, 1, 1], [], []>} : vector<16x128xbf16>, vector<128x512xbf16>, vector<16x512xf32> -> vector<16x512xf32>
    %202 = arith.addf %199, %201 : vector<16x512xf32>
    %203 = vector.extract_strided_slice %202 {offsets = [0, 0], sizes = [16, 128], strides = [1, 1]} : vector<16x512xf32> to vector<16x128xf32>
    %204 = arith.negf %203 : vector<16x128xf32>
    %205 = math.exp %204 : vector<16x128xf32>
    %cst_53 = arith.constant 1.000000e+00 : f32
    %206 = vector.broadcast %cst_53 : f32 to vector<16x128xf32>
    %207 = arith.addf %206, %205 : vector<16x128xf32>
    %208 = arith.divf %206, %207 : vector<16x128xf32>
    %209 = vector.extract_strided_slice %202 {offsets = [0, 128], sizes = [16, 128], strides = [1, 1]} : vector<16x512xf32> to vector<16x128xf32>
    %210 = arith.negf %209 : vector<16x128xf32>
    %211 = math.exp %210 : vector<16x128xf32>
    %cst_54 = arith.constant 1.000000e+00 : f32
    %212 = vector.broadcast %cst_54 : f32 to vector<16x128xf32>
    %213 = arith.addf %212, %211 : vector<16x128xf32>
    %214 = arith.divf %212, %213 : vector<16x128xf32>
    %215 = vector.extract_strided_slice %202 {offsets = [0, 256], sizes = [16, 128], strides = [1, 1]} : vector<16x512xf32> to vector<16x128xf32>
    %216 = math.tanh %215 : vector<16x128xf32>
    %217 = vector.extract_strided_slice %202 {offsets = [0, 384], sizes = [16, 128], strides = [1, 1]} : vector<16x512xf32> to vector<16x128xf32>
    %218 = arith.negf %217 : vector<16x128xf32>
    %219 = math.exp %218 : vector<16x128xf32>
    %cst_55 = arith.constant 1.000000e+00 : f32
    %220 = vector.broadcast %cst_55 : f32 to vector<16x128xf32>
    %221 = arith.addf %220, %219 : vector<16x128xf32>
    %222 = arith.divf %220, %221 : vector<16x128xf32>
    %223 = arith.mulf %214, %189 : vector<16x128xf32>
    %224 = arith.mulf %208, %216 : vector<16x128xf32>
    %225 = arith.addf %223, %224 : vector<16x128xf32>
    %226 = math.tanh %225 : vector<16x128xf32>
    %227 = arith.mulf %222, %226 : vector<16x128xf32>
    %228 = arith.truncf %227 : vector<16x128xf32> to vector<16x128xbf16>
    %229 = arith.index_cast %196 : i32 to index
    %c0_56 = arith.constant 0 : index
    %230 = vector.load %arg12[%229, %c0_56] : memref<128x128xbf16, #tpu.memory_space<vmem>>, vector<16x128xbf16>
    tpu.vector_store %arg12[%229, %c0_56], %228 {strides = array<i32>} : memref<128x128xbf16, #tpu.memory_space<vmem>>, vector<16x128xbf16>,
    %c6_i32 = arith.constant 6 : i32
    %c16_i32_57 = arith.constant 16 : i32
    %231 = arith.muli %c6_i32, %c16_i32_57 : i32
    %232 = tpu.assume_multiple %231, 16 : i32
    %233 = arith.index_cast %232 : i32 to index
    %c0_58 = arith.constant 0 : index
    %234 = vector.load %arg11[%233, %c0_58] : memref<128x512xbf16, #tpu.memory_space<vmem>>, vector<16x512xbf16>
    %235 = arith.extf %234 : vector<16x512xbf16> to vector<16x512xf32>
    %236 = arith.truncf %227 : vector<16x128xf32> to vector<16x128xbf16>
    %cst_59 = arith.constant dense<0.000000e+00> : vector<16x512xf32>
    %237 = tpu.matmul %236, %12, %cst_59 {dimension_numbers = #tpu.dot_dimension_numbers<[1], [0], [0], [1], [0, 0, 1, 1], [], []>} : vector<16x128xbf16>, vector<128x512xbf16>, vector<16x512xf32> -> vector<16x512xf32>
    %238 = arith.addf %235, %237 : vector<16x512xf32>
    %239 = vector.extract_strided_slice %238 {offsets = [0, 0], sizes = [16, 128], strides = [1, 1]} : vector<16x512xf32> to vector<16x128xf32>
    %240 = arith.negf %239 : vector<16x128xf32>
    %241 = math.exp %240 : vector<16x128xf32>
    %cst_60 = arith.constant 1.000000e+00 : f32
    %242 = vector.broadcast %cst_60 : f32 to vector<16x128xf32>
    %243 = arith.addf %242, %241 : vector<16x128xf32>
    %244 = arith.divf %242, %243 : vector<16x128xf32>
    %245 = vector.extract_strided_slice %238 {offsets = [0, 128], sizes = [16, 128], strides = [1, 1]} : vector<16x512xf32> to vector<16x128xf32>
    %246 = arith.negf %245 : vector<16x128xf32>
    %247 = math.exp %246 : vector<16x128xf32>
    %cst_61 = arith.constant 1.000000e+00 : f32
    %248 = vector.broadcast %cst_61 : f32 to vector<16x128xf32>
    %249 = arith.addf %248, %247 : vector<16x128xf32>
    %250 = arith.divf %248, %249 : vector<16x128xf32>
    %251 = vector.extract_strided_slice %238 {offsets = [0, 256], sizes = [16, 128], strides = [1, 1]} : vector<16x512xf32> to vector<16x128xf32>
    %252 = math.tanh %251 : vector<16x128xf32>
    %253 = vector.extract_strided_slice %238 {offsets = [0, 384], sizes = [16, 128], strides = [1, 1]} : vector<16x512xf32> to vector<16x128xf32>
    %254 = arith.negf %253 : vector<16x128xf32>
    %255 = math.exp %254 : vector<16x128xf32>
    %cst_62 = arith.constant 1.000000e+00 : f32
    %256 = vector.broadcast %cst_62 : f32 to vector<16x128xf32>
    %257 = arith.addf %256, %255 : vector<16x128xf32>
    %258 = arith.divf %256, %257 : vector<16x128xf32>
    %259 = arith.mulf %250, %225 : vector<16x128xf32>
    %260 = arith.mulf %244, %252 : vector<16x128xf32>
    %261 = arith.addf %259, %260 : vector<16x128xf32>
    %262 = math.tanh %261 : vector<16x128xf32>
    %263 = arith.mulf %258, %262 : vector<16x128xf32>
    %264 = arith.truncf %263 : vector<16x128xf32> to vector<16x128xbf16>
    %265 = arith.index_cast %232 : i32 to index
    %c0_63 = arith.constant 0 : index
    %266 = vector.load %arg12[%265, %c0_63] : memref<128x128xbf16, #tpu.memory_space<vmem>>, vector<16x128xbf16>
    tpu.vector_store %arg12[%265, %c0_63], %264 {strides = array<i32>} : memref<128x128xbf16, #tpu.memory_space<vmem>>, vector<16x128xbf16>,
    %c7_i32 = arith.constant 7 : i32
    %c16_i32_64 = arith.constant 16 : i32
    %267 = arith.muli %c7_i32, %c16_i32_64 : i32
    %268 = tpu.assume_multiple %267, 16 : i32
    %269 = arith.index_cast %268 : i32 to index
    %c0_65 = arith.constant 0 : index
    %270 = vector.load %arg11[%269, %c0_65] : memref<128x512xbf16, #tpu.memory_space<vmem>>, vector<16x512xbf16>
    %271 = arith.extf %270 : vector<16x512xbf16> to vector<16x512xf32>
    %272 = arith.truncf %263 : vector<16x128xf32> to vector<16x128xbf16>
    %cst_66 = arith.constant dense<0.000000e+00> : vector<16x512xf32>
    %273 = tpu.matmul %272, %12, %cst_66 {dimension_numbers = #tpu.dot_dimension_numbers<[1], [0], [0], [1], [0, 0, 1, 1], [], []>} : vector<16x128xbf16>, vector<128x512xbf16>, vector<16x512xf32> -> vector<16x512xf32>
    %274 = arith.addf %271, %273 : vector<16x512xf32>
    %275 = vector.extract_strided_slice %274 {offsets = [0, 0], sizes = [16, 128], strides = [1, 1]} : vector<16x512xf32> to vector<16x128xf32>
    %276 = arith.negf %275 : vector<16x128xf32>
    %277 = math.exp %276 : vector<16x128xf32>
    %cst_67 = arith.constant 1.000000e+00 : f32
    %278 = vector.broadcast %cst_67 : f32 to vector<16x128xf32>
    %279 = arith.addf %278, %277 : vector<16x128xf32>
    %280 = arith.divf %278, %279 : vector<16x128xf32>
    %281 = vector.extract_strided_slice %274 {offsets = [0, 128], sizes = [16, 128], strides = [1, 1]} : vector<16x512xf32> to vector<16x128xf32>
    %282 = arith.negf %281 : vector<16x128xf32>
    %283 = math.exp %282 : vector<16x128xf32>
    %cst_68 = arith.constant 1.000000e+00 : f32
    %284 = vector.broadcast %cst_68 : f32 to vector<16x128xf32>
    %285 = arith.addf %284, %283 : vector<16x128xf32>
    %286 = arith.divf %284, %285 : vector<16x128xf32>
    %287 = vector.extract_strided_slice %274 {offsets = [0, 256], sizes = [16, 128], strides = [1, 1]} : vector<16x512xf32> to vector<16x128xf32>
    %288 = math.tanh %287 : vector<16x128xf32>
    %289 = vector.extract_strided_slice %274 {offsets = [0, 384], sizes = [16, 128], strides = [1, 1]} : vector<16x512xf32> to vector<16x128xf32>
    %290 = arith.negf %289 : vector<16x128xf32>
    %291 = math.exp %290 : vector<16x128xf32>
    %cst_69 = arith.constant 1.000000e+00 : f32
    %292 = vector.broadcast %cst_69 : f32 to vector<16x128xf32>
    %293 = arith.addf %292, %291 : vector<16x128xf32>
    %294 = arith.divf %292, %293 : vector<16x128xf32>
    %295 = arith.mulf %286, %261 : vector<16x128xf32>
    %296 = arith.mulf %280, %288 : vector<16x128xf32>
    %297 = arith.addf %295, %296 : vector<16x128xf32>
    %298 = math.tanh %297 : vector<16x128xf32>
    %299 = arith.mulf %294, %298 : vector<16x128xf32>
    %300 = arith.truncf %299 : vector<16x128xf32> to vector<16x128xbf16>
    %301 = arith.index_cast %268 : i32 to index
    %c0_70 = arith.constant 0 : index
    %302 = vector.load %arg12[%301, %c0_70] : memref<128x128xbf16, #tpu.memory_space<vmem>>, vector<16x128xbf16>
    tpu.vector_store %arg12[%301, %c0_70], %300 {strides = array<i32>} : memref<128x128xbf16, #tpu.memory_space<vmem>>, vector<16x128xbf16>,
    %c8_i32 = arith.constant 8 : i32
    %c0_71 = arith.constant 0 : index
    %c0_72 = arith.constant 0 : index
    %303 = vector.load %arg9[%c0_71, %c0_72] : memref<16x128xf32, #tpu.memory_space<vmem>>, vector<16x128xf32>
    tpu.vector_store %arg9[%c0_71, %c0_72], %299 {strides = array<i32>} : memref<16x128xf32, #tpu.memory_space<vmem>>, vector<16x128xf32>,
    %c0_73 = arith.constant 0 : index
    %c0_74 = arith.constant 0 : index
    %304 = vector.load %arg10[%c0_73, %c0_74] : memref<16x128xf32, #tpu.memory_space<vmem>>, vector<16x128xf32>
    tpu.vector_store %arg10[%c0_73, %c0_74], %297 {strides = array<i32>} : memref<16x128xf32, #tpu.memory_space<vmem>>, vector<16x128xf32>,
    %c0_75 = arith.constant 0 : index
    %c0_76 = arith.constant 0 : index
    %305 = vector.load %arg12[%c0_75, %c0_76] : memref<128x128xbf16, #tpu.memory_space<vmem>>, vector<128x128xbf16>
    %c0_77 = arith.constant 0 : index
    %c0_78 = arith.constant 0 : index
    %306 = vector.load %arg6[%c0_77, %c0_78] : memref<128x128xbf16, #tpu.memory_space<vmem>>, vector<128x128xbf16>
    %cst_79 = arith.constant dense<0.000000e+00> : vector<128x128xf32>
    %307 = tpu.matmul %305, %306, %cst_79 {dimension_numbers = #tpu.dot_dimension_numbers<[1], [0], [0], [1], [0, 0, 1, 1], [], []>} : vector<128x128xbf16>, vector<128x128xbf16>, vector<128x128xf32> -> vector<128x128xf32>
    %c0_80 = arith.constant 0 : index
    %c0_81 = arith.constant 0 : index
    %308 = vector.load %arg7[%c0_80, %c0_81] : memref<1x128xf32, #tpu.memory_space<vmem>>, vector<1x128xf32>
    %309 = vector.broadcast %308 : vector<1x128xf32> to vector<128x128xf32>
    %310 = arith.addf %307, %309 : vector<128x128xf32>
    %311 = vector.shape_cast %310 : vector<128x128xf32> to vector<8x16x128xf32>
    %c0_82 = arith.constant 0 : index
    %c0_83 = arith.constant 0 : index
    %c0_84 = arith.constant 0 : index
    %312 = vector.load %arg8[%c0_82, %c0_83, %c0_84] : memref<8x16x128xf32, #tpu.memory_space<vmem>>, vector<8x16x128xf32>
    tpu.vector_store %arg8[%c0_82, %c0_83, %c0_84], %311 {strides = array<i32>} : memref<8x16x128xf32, #tpu.memory_space<vmem>>, vector<8x16x128xf32>,
    return
  }
  func.func @transform_0(%arg0: i32, %arg1: i32) -> (i32, i32, i32) {
    %c0_i32 = arith.constant 0 : i32
    %c0_i32_0 = arith.constant 0 : i32
    return %arg1, %arg0, %c0_i32 : i32, i32, i32
  }
  func.func @transform_1(%arg0: i32, %arg1: i32) -> (i32, i32) {
    %c0_i32 = arith.constant 0 : i32
    %c0_i32_0 = arith.constant 0 : i32
    %c0_i32_1 = arith.constant 0 : i32
    return %c0_i32, %c0_i32_0 : i32, i32
  }
  func.func @transform_2(%arg0: i32, %arg1: i32) -> (i32, i32) {
    %c0_i32 = arith.constant 0 : i32
    %c0_i32_0 = arith.constant 0 : i32
    %c0_i32_1 = arith.constant 0 : i32
    return %c0_i32, %c0_i32_0 : i32, i32
  }
  func.func @transform_3(%arg0: i32, %arg1: i32) -> (i32, i32) {
    %c0_i32 = arith.constant 0 : i32
    %c0_i32_0 = arith.constant 0 : i32
    %c0_i32_1 = arith.constant 0 : i32
    return %c0_i32, %c0_i32_0 : i32, i32
  }
  func.func @transform_4(%arg0: i32, %arg1: i32) -> (i32, i32) {
    %c0_i32 = arith.constant 0 : i32
    %c0_i32_0 = arith.constant 0 : i32
    %c0_i32_1 = arith.constant 0 : i32
    return %c0_i32, %c0_i32_0 : i32, i32
  }
  func.func @transform_5(%arg0: i32, %arg1: i32) -> (i32, i32) {
    %c0_i32 = arith.constant 0 : i32
    %c0_i32_0 = arith.constant 0 : i32
    %c0_i32_1 = arith.constant 0 : i32
    return %c0_i32, %c0_i32_0 : i32, i32
  }
  func.func @transform_6(%arg0: i32, %arg1: i32) -> (i32, i32, i32) {
    %c0_i32 = arith.constant 0 : i32
    %c0_i32_0 = arith.constant 0 : i32
    return %arg1, %arg0, %c0_i32 : i32, i32, i32
  }
}

</mosaic_0001>

<bundles_post_ra>
// kernel: tpu_custom_call.1
= control target key start
LH: loop header
LB: loop body
LE: loop exit
PB: predicated region body
PF: predicated region fallthrough
CT: control target
= control target key end

     0   :  { %11 = vsyncpa [#allocation7], 0  ;;  %s3760_s0 = inlined_call_operand.hbm [shape: bf16[8,16,16], index: 0, kind: input, shape index: {}]   ;;  %s3761_s1 = inlined_call_operand.hbm [shape: bf16[16,512], index: 1, kind: input, shape index: {}]   ;;  %s3762_s2 = inlined_call_operand.hbm [shape: bf16[128,512], index: 2, kind: input, shape index: {}]   ;;  %s3763_s3 = inlined_call_operand.vmem [shape: f32[1,512], index: 3, kind: input, shape index: {}]   ;;  %s3764_s4 = inlined_call_operand.hbm [shape: bf16[128,128], index: 4, kind: input, shape index: {}]   ;;  %s3765_s5 = inlined_call_operand.vmem [shape: f32[1,128], index: 5, kind: input, shape index: {}]   ;;  %s3766_s6 = inlined_call_operand.hbm [shape: f32[8,16,128], index: 6, kind: output, shape index: {}]  }
   0x1   :  { %12 = vsyncpa [#allocation10], 0 }
   0x2   :  { %13 = vsyncpa [#allocation13], 0 }
   0x3   :  { %14 = vsyncpa [#allocation8], 0  ;;  %s2859_s21 = smov [#allocation9]   ;;  %s2741_s25 = scalar_lea.hbm %s3761_s1, 512 }
   0x4   :  { %s32_s22 = sshll.u32 %s2859_s21, 4  ;;  %p2742_p0 = scmp.ne.s32.totalorder %s3761_s1, %s2741_s25  ;;  %s33_s22 = int_to_ptr.vmem [resolvable:$true] %s32_s22 }
   0x5   :  { %p2745_p1 = scmp.lt.u32.totalorder %s2741_s25, %s3761_s1 }
   0x7   :  { %p2747_p2 = pnand %p2745_p1, %p2742_p0 }
   0x9   :  { %2750 = shalt.err (!%p2747_p2)
}
   0xa   :  { %s2751_s30 = scalar_lea.vmem %s33_s22, 512  ;;  %p2756_p4 = scmp.lt.s32.totalorder %s33_s22, %s33_s22 }
   0xb   :  { %p2752_p3 = scmp.ne.s32.totalorder %s33_s22, %s2751_s30  ;;  %p2757_p5 = scmp.lt.s32.totalorder %s2751_s30, %s2751_s30 }
   0xd   :  { %p2758_p6 = por %p2757_p5, %p2756_p4 }
   0xf   :  { %p2759_p7 = pnand %p2758_p6, %p2752_p3 }
  0x11   :  { %2762 = shalt.err (!%p2759_p7)
}
  0x12   :  { %s2860_s7 = smov 256   ;;  %s2861_s8 = smov 16  }
  0x13   :  { %38 = dma.hbm_to_vmem [thread:$0]  %s3761_s1, 512, %s33_s22, [#allocation10], %s2860_s7, %s2860_s7, %s2861_s8  }
  0x14   :  { %s2862_s11 = smov [#allocation6]   ;;  %s2763_s15 = scalar_lea.hbm %s3760_s0, 1024 }
  0x15   :  { %s20_s12 = sshll.u32 %s2862_s11, 4  ;;  %p2764_p8 = scmp.ne.s32.totalorder %s3760_s0, %s2763_s15  ;;  %s21_s12 = int_to_ptr.vmem [resolvable:$true] %s20_s12 }
  0x16   :  { %p2767_p9 = scmp.lt.u32.totalorder %s2763_s15, %s3760_s0 }
  0x18   :  { %p2769_p10 = pnand %p2767_p9, %p2764_p8 }
  0x1a   :  { %2772 = shalt.err (!%p2769_p10)
}
  0x1b   :  { %s2773_s20 = scalar_lea.vmem %s21_s12, 1024  ;;  %p2778_p12 = scmp.lt.s32.totalorder %s21_s12, %s21_s12 }
  0x1c   :  { %p2774_p11 = scmp.ne.s32.totalorder %s21_s12, %s2773_s20  ;;  %p2779_p13 = scmp.lt.s32.totalorder %s2773_s20, %s2773_s20 }
  0x1e   :  { %p2780_p0 = por %p2779_p13, %p2778_p12 }
  0x20   :  { %p2781_p1 = pnand %p2780_p0, %p2774_p11 }
  0x22   :  { %2784 = shalt.err (!%p2781_p1)
}
  0x23   :  { %s2863_s1 = smov 64   ;;  %s2864_s21 = smov 4  }
  0x24   :  { %26 = dma.hbm_to_vmem [thread:$0]  %s3760_s0, 1024, %s21_s12, [#allocation7], %s2863_s1, %s2863_s1, %s2864_s21  }
  0x25   :  { %s2865_s24 = smov [#allocation11]   ;;  %s2866_s26 = smov [#allocation12]  }
  0x26   :  { %s44_s25 = sshll.u32 %s2865_s24, 4  ;;  %s58_s27 = sshll.u32 %s2866_s26, 4  ;;  %s45_s25 = int_to_ptr.vmem [resolvable:$true] %s44_s25  ;;  %s2937_s27 = int_to_ptr.vmem [resolvable:$true] %s58_s27 }
  0x27   :  { %s2785_s30 = scalar_lea.hbm %s3762_s2, 4096 }
  0x28   :  { %p2786_p2 = scmp.ne.s32.totalorder %s3762_s2, %s2785_s30  ;;  %p2789_p3 = scmp.lt.u32.totalorder %s2785_s30, %s3762_s2 }
  0x2a   :  { %p2791_p4 = pnand %p2789_p3, %p2786_p2 }
  0x2c   :  { %2794 = shalt.err (!%p2791_p4)
}
  0x2d   :  { %s2795_s0 = scalar_lea.vmem %s45_s25, 4096  ;;  %p2800_p6 = scmp.lt.s32.totalorder %s45_s25, %s45_s25 }
  0x2e   :  { %p2796_p5 = scmp.ne.s32.totalorder %s45_s25, %s2795_s0  ;;  %p2801_p7 = scmp.lt.s32.totalorder %s2795_s0, %s2795_s0 }
  0x30   :  { %p2802_p8 = por %p2801_p7, %p2800_p6 }
  0x32   :  { %p2803_p9 = pnand %p2802_p8, %p2796_p5 }
  0x34   :  { %2806 = shalt.err (!%p2803_p9)
}
  0x35   :  { %50 = dma.hbm_to_vmem [thread:$0]  %s3762_s2, 4096, %s45_s25, [#allocation10], %s2860_s7, %s2860_s7, %s2861_s8  }
  0x36   :  { %s2807_s17 = scalar_lea.hbm %s3764_s4, 1024 }
  0x37   :  { %p2808_p10 = scmp.ne.s32.totalorder %s3764_s4, %s2807_s17  ;;  %p2811_p11 = scmp.lt.u32.totalorder %s2807_s17, %s3764_s4 }
  0x39   :  { %p2813_p12 = pnand %p2811_p11, %p2808_p10 }
  0x3b   :  { %2816 = shalt.err (!%p2813_p12)
}
  0x3c   :  { %s2817_s23 = scalar_lea.vmem %s2937_s27, 1024  ;;  %p2822_p0 = scmp.lt.s32.totalorder %s2937_s27, %s2937_s27 }
  0x3d   :  { %p2818_p13 = scmp.ne.s32.totalorder %s2937_s27, %s2817_s23  ;;  %p2823_p1 = scmp.lt.s32.totalorder %s2817_s23, %s2817_s23 }
  0x3f   :  { %p2824_p2 = por %p2823_p1, %p2822_p0 }
  0x41   :  { %p2825_p3 = pnand %p2824_p2, %p2818_p13 }
  0x43   :  { %2828 = shalt.err (!%p2825_p3)
}
  0x44   :  { %64 = dma.hbm_to_vmem [thread:$0]  %s3764_s4, 1024, %s2937_s27, [#allocation13], %s2863_s1, %s2863_s1, %s2864_s21  }
  0x45   :  { %2851 = dma.done.wait [#allocation7], 1024  }
  0x46   :  { %2852 = vsyncadd [#allocation7], 4294966272 }
  0x47   :  { %2853 = dma.done.wait [#allocation10], 4608  }
  0x48   :  { %2854 = vsyncadd [#allocation10], 4294962688 }
  0x49   :  { %2855 = dma.done.wait [#allocation13], 1024  }
  0x4a   :  { %2856 = vsyncadd [#allocation13], 4294966272  ;;  %v3767_v0 = vmov 0   ;;  %v2383_v1 = vld [vmem:[#allocation9 + $0x4] ss:$16 sps:$4 sm:$0xff]   ;;  %vm190_vm0 = vcmask 130048   ;;  %v110_v46 = vlaneseq }
  0x4b   :  { %287 = vmatprep.mubr.bf16.mxu1 %v3767_v0  ;;  %247 = vmatprep.mubr.bf16.mxu0 %v3767_v0  ;;  %v2385_v2 = vld [vmem:[#allocation9] ss:$16 sps:$4 sm:$0xff]   ;;  %v2387_v4 = vld [vmem:[#allocation9 + $0x8] ss:$16 sps:$4 sm:$0xff]   ;;  %v2389_v5 = vld [vmem:[#allocation9 + $0xc] ss:$16 sps:$4 sm:$0xff]  }
  0x4c   :  { %2368 = vmatprep.subr.bf16.mxu1 %v2383_v1  ;;  %v2976_v3 = vld [vmem:[#allocation6 + $0x20] sm:$0xff]   ;;  %215 = vmatprep.subr.bf16.mxu0 %v2383_v1  ;;  %v2985_v9 = vld [vmem:[#allocation6 + $0x28] sm:$0xff]   ;;  %v3011_v17 = vld [vmem:[#allocation6 + $0x30] sm:$0xff]   ;;  %v2868_v34 = vmov 0.0|0.0   ;;  %v3156_v47 = vshrl.u32 %v110_v46, 7 }
  0x4d   :  { %2369 = vmatpush1.bf16.msra.mxu1 %v2385_v2  ;;  %216 = vmatpush1.bf16.msra.mxu0 %v2385_v2  ;;  %v2392_v6 = vld [vmem:[#allocation6] sm:$0xff]   ;;  %v2400_v12 = vld [vmem:[#allocation6 + $0x8] sm:$0xff]   ;;  %v2410_v20 = vld [vmem:[#allocation6 + $0x10] sm:$0xff]  }
  0x4e   :  { %328 = vmatprep.subr.bf16.mxu1 %v2389_v5  ;;  %v2981_v7 = vld [vmem:[#allocation11 + $0x4] ss:$16 sps:$4 sm:$0xff]   ;;  %v2983_v8 = vld [vmem:[#allocation11] ss:$16 sps:$4 sm:$0xff]   ;;  %v2998_v14 = vld [vmem:[#allocation11 + $0xc] ss:$16 sps:$4 sm:$0xff]  }
  0x4f   :  { %717 = vmatprep.subr.bf16.mxu0 %v2981_v7  ;;  %v2989_v10 = vld [vmem:[#allocation11 + $0x24] ss:$16 sps:$4 sm:$0xff]   ;;  %v2993_v11 = vld [vmem:[#allocation11 + $0x20] ss:$16 sps:$4 sm:$0xff]   ;;  %v3031_v23 = vld [vmem:[#allocation6 + $0x38] sm:$0xff]   ;;  %v112_v48 = vsub.s32 0, %v3156_v47 }
  0x50   :  { %2219 = vmatmul.mubr.msk.bf16.vlgmr.msra.gmra.mrb[0].mxu1 %vm190_vm0, %v2976_v3  ;;  %2215 = vmatmul.mubr.msk.bf16.vlgmr.msra.gmra.mrb[0].mxu0 %vm190_vm0, %v2392_v6  ;;  %v2996_v13 = vld [vmem:[#allocation11 + $0x44] ss:$16 sps:$4 sm:$0xff]   ;;  %v3003_v15 = vld [vmem:[#allocation11 + $0x40] ss:$16 sps:$4 sm:$0xff]   ;;  %v2420_v26 = vld [vmem:[#allocation6 + $0x18] sm:$0xff]   ;;  %v116_v50 = vsub.s32 1, %v3156_v47 }
  0x51   :  { %329 = vmatpush1.bf16.msra.mxu1 %v2387_v4  ;;  %297 = vmatprep.mubr.bf16.mxu1 %v3767_v0  ;;  %v3007_v16 = vld [vmem:[#allocation11 + $0x64] ss:$16 sps:$4 sm:$0xff]   ;;  %v3015_v18 = vld [vmem:[#allocation11 + $0x60] ss:$16 sps:$4 sm:$0xff]   ;;  %v3051_v30 = vld [vmem:[#allocation11 + $0x8] ss:$16 sps:$4 sm:$0xff]  }
  0x52   :  { %257 = vmatprep.mubr.bf16.mxu0 %v3767_v0  ;;  %718 = vmatpush1.bf16.msra.mxu0 %v2983_v8  ;;  %v3018_v19 = vld [vmem:[#allocation11 + $0x84] ss:$16 sps:$4 sm:$0xff]   ;;  %v3023_v21 = vld [vmem:[#allocation11 + $0x80] ss:$16 sps:$4 sm:$0xff]   ;;  %v3054_v31 = vld [vmem:[#allocation11 + $0x2c] ss:$16 sps:$4 sm:$0xff]  }
  0x53   :  { %719 = vmatprep.subr.bf16.mxu0 %v2989_v10  ;;  %760 = vmatprep.subr.bf16.mxu1 %v2998_v14  ;;  %v3027_v22 = vld [vmem:[#allocation11 + $0xa4] ss:$16 sps:$4 sm:$0xff]   ;;  %v3034_v24 = vld [vmem:[#allocation11 + $0xa0] ss:$16 sps:$4 sm:$0xff]   ;;  %v3062_v32 = vld [vmem:[#allocation11 + $0x28] ss:$16 sps:$4 sm:$0xff]  }
  0x54   :  { %v3037_v25 = vld [vmem:[#allocation11 + $0xc4] ss:$16 sps:$4 sm:$0xff]   ;;  %v3042_v27 = vld [vmem:[#allocation11 + $0xc0] ss:$16 sps:$4 sm:$0xff]   ;;  %v3065_v33 = vld [vmem:[#allocation11 + $0x4c] ss:$16 sps:$4 sm:$0xff]  }
  0x55   :  { %v3046_v28 = vld [vmem:[#allocation11 + $0xe4] ss:$16 sps:$4 sm:$0xff]   ;;  %v3049_v29 = vld [vmem:[#allocation11 + $0xe0] ss:$16 sps:$4 sm:$0xff]   ;;  %v3071_v35 = vld [vmem:[#allocation11 + $0x48] ss:$16 sps:$4 sm:$0xff]  }
  0x56   :  { %720 = vmatpush1.bf16.msra.mxu0 %v2993_v11  ;;  %v3075_v36 = vld [vmem:[#allocation11 + $0x6c] ss:$16 sps:$4 sm:$0xff]   ;;  %v3081_v37 = vld [vmem:[#allocation11 + $0x68] ss:$16 sps:$4 sm:$0xff]   ;;  %v3162_v49 = vld [vmem:[%s3763_s3] sm:$0xf] }
  0x57   :  { %721 = vmatprep.subr.bf16.mxu0 %v2996_v13  ;;  %v3084_v38 = vld [vmem:[#allocation11 + $0x8c] ss:$16 sps:$4 sm:$0xff]   ;;  %v3089_v39 = vld [vmem:[#allocation11 + $0x88] ss:$16 sps:$4 sm:$0xff]   ;;  %v3166_v51 = vrot.slane %v3162_v49, %v112_v48  ;;  %v3169_v52 = vrot.slane %v3162_v49, %v116_v50 }
  0x58   :  { %2220 = vmatmul.mubr.msk.bf16.gmra.mrb[4].mxu1 %vm190_vm0, %v2985_v9  ;;  %2216 = vmatmul.mubr.msk.bf16.gmra.mrb[4].mxu0 %vm190_vm0, %v2400_v12  ;;  %v3093_v40 = vld [vmem:[#allocation11 + $0xac] ss:$16 sps:$4 sm:$0xff]   ;;  %v3099_v41 = vld [vmem:[#allocation11 + $0xa8] ss:$16 sps:$4 sm:$0xff]  }
  0x59   :  { %307 = vmatprep.mubr.bf16.mxu1 %v3767_v0  ;;  %267 = vmatprep.mubr.bf16.mxu0 %v3767_v0  ;;  %v3102_v42 = vld [vmem:[#allocation11 + $0xcc] ss:$16 sps:$4 sm:$0xff]   ;;  %v3107_v43 = vld [vmem:[#allocation11 + $0xc8] ss:$16 sps:$4 sm:$0xff]  }
  0x5a   :  { %722 = vmatpush1.bf16.msra.mxu0 %v3003_v15  ;;  %v3111_v44 = vld [vmem:[#allocation11 + $0xec] ss:$16 sps:$4 sm:$0xff]   ;;  %v3117_v45 = vld [vmem:[#allocation11 + $0xe8] ss:$16 sps:$4 sm:$0xff]  }
  0x5b   :  { %723 = vmatprep.subr.bf16.mxu0 %v3007_v16 }
  0x5e   :  { %724 = vmatpush1.bf16.msra.mxu0 %v3015_v18 }
  0x5f   :  { %725 = vmatprep.subr.bf16.mxu0 %v3018_v19 }
  0x60   :  { %2221 = vmatmul.mubr.msk.bf16.gmra.mrb[8].mxu1 %vm190_vm0, %v3011_v17  ;;  %2217 = vmatmul.mubr.msk.bf16.gmra.mrb[8].mxu0 %vm190_vm0, %v2410_v20 }
  0x61   :  { %317 = vmatprep.mubr.bf16.mxu1 %v3767_v0  ;;  %277 = vmatprep.mubr.bf16.mxu0 %v3767_v0 }
  0x62   :  { %726 = vmatpush1.bf16.msra.mxu0 %v3023_v21 }
  0x63   :  { %727 = vmatprep.subr.bf16.mxu0 %v3027_v22 }
  0x66   :  { %728 = vmatpush1.bf16.msra.mxu0 %v3034_v24 }
  0x67   :  { %729 = vmatprep.subr.bf16.mxu0 %v3037_v25 }
  0x68   :  { %2222 = vmatmul.mubr.msk.bf16.gmra.mrb[12].mxu1 %vm190_vm0, %v3031_v23  ;;  %2218 = vmatmul.mubr.msk.bf16.gmra.mrb[12].mxu0 %vm190_vm0, %v2420_v26 }
  0x69   :  { %360 = vmatprep.mubr.bf16.mxu1 %v3767_v0  ;;  %749 = vmatprep.mubr.bf16.mxu0 %v3767_v0 }
  0x6a   :  { %730 = vmatpush1.bf16.msra.mxu0 %v3042_v27 }
  0x6b   :  { %731 = vmatprep.subr.bf16.mxu0 %v3046_v28 }
  0x6e   :  { %732 = vmatpush1.bf16.msra.mxu0 %v3049_v29 }
  0x6f   :  { %876 = vmatprep.subr.bf16.mxu0 %v2981_v7 }
  0x70   :  { %2223 = vmatmul.mubr.msk.bf16.vlgmr.msra.gmra.mrb[16].mxu1 %vm190_vm0, %v2392_v6 }
  0x71   :  { %761 = vmatpush1.bf16.msra.mxu1 %v3051_v30  ;;  %370 = vmatprep.mubr.bf16.mxu1 %v3767_v0 }
  0x72   :  { %762 = vmatprep.subr.bf16.mxu1 %v3054_v31  ;;  %750 = vmatmul.mubr.bf16.vlgmr.msra.gmra.mrb[16].mxu0 %v2868_v34 }
  0x73   :  { %877 = vmatpush1.bf16.msra.mxu0 %v2983_v8  ;;  %908 = vmatprep.mubr.bf16.mxu0 %v3767_v0 }
  0x74   :  { %878 = vmatprep.subr.bf16.mxu0 %v2989_v10 }
  0x75   :  { %763 = vmatpush1.bf16.msra.mxu1 %v3062_v32 }
  0x76   :  { %764 = vmatprep.subr.bf16.mxu1 %v3065_v33 }
  0x77   :  { %879 = vmatpush1.bf16.msra.mxu0 %v2993_v11 }
  0x78   :  { %2224 = vmatmul.mubr.msk.bf16.gmra.mrb[20].mxu1 %vm190_vm0, %v2400_v12  ;;  %880 = vmatprep.subr.bf16.mxu0 %v2996_v13 }
  0x79   :  { %380 = vmatprep.mubr.bf16.mxu1 %v3767_v0  ;;  %765 = vmatpush1.bf16.msra.mxu1 %v3071_v35 }
  0x7a   :  { %766 = vmatprep.subr.bf16.mxu1 %v3075_v36 }
  0x7b   :  { %881 = vmatpush1.bf16.msra.mxu0 %v3003_v15 }
  0x7c   :  { %882 = vmatprep.subr.bf16.mxu0 %v3007_v16 }
  0x7d   :  { %767 = vmatpush1.bf16.msra.mxu1 %v3081_v37 }
  0x7e   :  { %768 = vmatprep.subr.bf16.mxu1 %v3084_v38 }
  0x7f   :  { %883 = vmatpush1.bf16.msra.mxu0 %v3015_v18 }
  0x80   :  { %2225 = vmatmul.mubr.msk.bf16.gmra.mrb[24].mxu1 %vm190_vm0, %v2410_v20  ;;  %884 = vmatprep.subr.bf16.mxu0 %v3018_v19 }
  0x81   :  { %390 = vmatprep.mubr.bf16.mxu1 %v3767_v0  ;;  %769 = vmatpush1.bf16.msra.mxu1 %v3089_v39 }
  0x82   :  { %770 = vmatprep.subr.bf16.mxu1 %v3093_v40 }
  0x83   :  { %885 = vmatpush1.bf16.msra.mxu0 %v3023_v21 }
  0x84   :  { %886 = vmatprep.subr.bf16.mxu0 %v3027_v22 }
  0x85   :  { %771 = vmatpush1.bf16.msra.mxu1 %v3099_v41 }
  0x86   :  { %772 = vmatprep.subr.bf16.mxu1 %v3102_v42 }
  0x87   :  { %887 = vmatpush1.bf16.msra.mxu0 %v3034_v24 }
  0x88   :  { %2226 = vmatmul.mubr.msk.bf16.gmra.mrb[28].mxu1 %vm190_vm0, %v2420_v26  ;;  %888 = vmatprep.subr.bf16.mxu0 %v3037_v25 }
  0x89   :  { %400 = vmatprep.mubr.bf16.mxu1 %v3767_v0  ;;  %773 = vmatpush1.bf16.msra.mxu1 %v3107_v43 }
  0x8a   :  { %774 = vmatprep.subr.bf16.mxu1 %v3111_v44 }
  0x8b   :  { %889 = vmatpush1.bf16.msra.mxu0 %v3042_v27 }
  0x8c   :  { %890 = vmatprep.subr.bf16.mxu0 %v3046_v28 }
  0x8d   :  { %775 = vmatpush1.bf16.msra.mxu1 %v3117_v45 }
  0x8e   :  { %919 = vmatprep.subr.bf16.mxu1 %v2998_v14 }
  0x8f   :  { %891 = vmatpush1.bf16.msra.mxu0 %v3049_v29 }
  0x90   :  { %2227 = vmatmul.mubr.msk.bf16.gmra.mrb[32].mxu1 %vm190_vm0, %v2976_v3  ;;  %1036 = vmatprep.subr.bf16.mxu0 %v2981_v7 }
  0x91   :  { %410 = vmatprep.mubr.bf16.mxu1 %v3767_v0 }
  0x98   :  { %2228 = vmatmul.mubr.msk.bf16.gmra.mrb[36].mxu1 %vm190_vm0, %v2985_v9 }
  0x99   :  { %420 = vmatprep.mubr.bf16.mxu1 %v3767_v0 }
  0xa0   :  { %2229 = vmatmul.mubr.msk.bf16.gmra.mrb[40].mxu1 %vm190_vm0, %v3011_v17 }
  0xa1   :  { %430 = vmatprep.mubr.bf16.mxu1 %v3767_v0 }
  0xa8   :  { %2230 = vmatmul.mubr.msk.bf16.gmra.mrb[44].mxu1 %vm190_vm0, %v3031_v23 }
  0xa9   :  { %792 = vmatprep.mubr.bf16.mxu1 %v3767_v0 }
  0xb0   :  { %793 = vmatmul.mubr.bf16.vlgmr.msra.gmra.mrb[48].mxu1 %v2868_v34 }
  0xb1   :  { %920 = vmatpush1.bf16.msra.mxu1 %v3051_v30  ;;  %951 = vmatprep.mubr.bf16.mxu1 %v3767_v0 }
  0xb2   :  { %921 = vmatprep.subr.bf16.mxu1 %v3054_v31 }
  0xb5   :  { %922 = vmatpush1.bf16.msra.mxu1 %v3062_v32 }
  0xb6   :  { %923 = vmatprep.subr.bf16.mxu1 %v3065_v33 }
  0xb9   :  { %924 = vmatpush1.bf16.msra.mxu1 %v3071_v35 }
  0xba   :  { %925 = vmatprep.subr.bf16.mxu1 %v3075_v36 }
  0xbd   :  { %926 = vmatpush1.bf16.msra.mxu1 %v3081_v37 }
  0xbe   :  { %927 = vmatprep.subr.bf16.mxu1 %v3084_v38 }
  0xc1   :  { %928 = vmatpush1.bf16.msra.mxu1 %v3089_v39 }
  0xc2   :  { %929 = vmatprep.subr.bf16.mxu1 %v3093_v40 }
  0xc5   :  { %930 = vmatpush1.bf16.msra.mxu1 %v3099_v41 }
  0xc6   :  { %931 = vmatprep.subr.bf16.mxu1 %v3102_v42 }
  0xc9   :  { %932 = vmatpush1.bf16.msra.mxu1 %v3107_v43 }
  0xca   :  { %933 = vmatprep.subr.bf16.mxu1 %v3111_v44 }
  0xcd   :  { %934 = vmatpush1.bf16.msra.mxu1 %v3117_v45 }
  0xce   :  { %1079 = vmatprep.subr.bf16.mxu1 %v2998_v14 }
 0x123   :  { %v289_v53 = vpop.f32.mrb[0].mxu1  ;;  %v249_v58 = vpop.f32.mrb[0].mxu0 }
 0x124   :  { %v290_v54 = vadd.f32 %v289_v53, %v3166_v51  ;;  %v291_v55 = vpop.f32.mrb[1].mxu1  ;;  %v250_v61 = vadd.f32 %v249_v58, %v3166_v51  ;;  %v251_v62 = vpop.f32.mrb[1].mxu0 }
 0x125   :  { %v292_v56 = vadd.f32 %v291_v55, %v3169_v52  ;;  %v293_v57 = vpop.f32.mrb[2].mxu1  ;;  %v252_v1 = vadd.f32 %v251_v62, %v3169_v52  ;;  %v253_v2 = vpop.f32.mrb[2].mxu0 }
 0x126   :  { %v294_v59 = vadd.f32 %v293_v57, %v3166_v51  ;;  %v295_v60 = vpop.f32.mrb[3].mxu1  ;;  %v254_v4 = vadd.f32 %v253_v2, %v3166_v51  ;;  %v255_v5 = vpop.f32.mrb[3].mxu0 }
 0x127   :  { %v296_v63 = vadd.f32 %v295_v60, %v3169_v52  ;;  %v256_v9 = vadd.f32 %v255_v5, %v3169_v52 }
 0x128   :  { %v3177_v3 = vpack.c.bf16 %v294_v59, %v290_v54  ;;  %v3183_v12 = vpack.c.bf16 %v254_v4, %v250_v61 }
 0x129   :  { %v3180_v6 = vpack.c.bf16 %v296_v63, %v292_v56  ;;  %v3185_v20 = vpack.c.bf16 %v256_v9, %v252_v1 }
 0x12a   :  { %3791 = vst [vmem:[#allocation19_spill] sm:$0xff] %v3177_v3 }
 0x12b   :  { %3792 = vst [vmem:[#allocation20_spill] sm:$0xff] %v3180_v6  ;;  %v299_v17 = vpop.f32.mrb[4].mxu1  ;;  %v259_v48 = vpop.f32.mrb[4].mxu0 }
 0x12c   :  { %v300_v23 = vadd.f32 %v299_v17, %v3166_v51  ;;  %v301_v26 = vpop.f32.mrb[5].mxu1  ;;  %v260_v54 = vadd.f32 %v259_v48, %v3166_v51  ;;  %v261_v55 = vpop.f32.mrb[5].mxu0 }
 0x12d   :  { %v302_v34 = vadd.f32 %v301_v26, %v3169_v52  ;;  %v303_v46 = vpop.f32.mrb[6].mxu1  ;;  %v262_v57 = vadd.f32 %v261_v55, %v3169_v52  ;;  %v263_v58 = vpop.f32.mrb[6].mxu0 }
 0x12e   :  { %v304_v50 = vadd.f32 %v303_v46, %v3166_v51  ;;  %v305_v53 = vpop.f32.mrb[7].mxu1  ;;  %v264_v60 = vadd.f32 %v263_v58, %v3166_v51  ;;  %v265_v61 = vpop.f32.mrb[7].mxu0 }
 0x12f   :  { %v306_v56 = vadd.f32 %v305_v53, %v3169_v52  ;;  %v266_v63 = vadd.f32 %v265_v61, %v3169_v52 }
 0x130   :  { %v3193_v59 = vpack.c.bf16 %v304_v50, %v300_v23  ;;  %v3199_v1 = vpack.c.bf16 %v264_v60, %v260_v54 }
 0x131   :  { %v3196_v62 = vpack.c.bf16 %v306_v56, %v302_v34  ;;  %v3201_v4 = vpack.c.bf16 %v266_v63, %v262_v57 }
 0x132   :  { %3793 = vst [vmem:[#allocation21_spill] sm:$0xff] %v3193_v59 }
 0x133   :  { %3794 = vst [vmem:[#allocation22_spill] sm:$0xff] %v3196_v62  ;;  %v309_v2 = vpop.f32.mrb[8].mxu1  ;;  %v269_v23 = vpop.f32.mrb[8].mxu0 }
 0x134   :  { %v310_v5 = vadd.f32 %v309_v2, %v3166_v51  ;;  %v311_v9 = vpop.f32.mrb[9].mxu1  ;;  %v270_v34 = vadd.f32 %v269_v23, %v3166_v51  ;;  %v271_v50 = vpop.f32.mrb[9].mxu0 }
 0x135   :  { %v312_v17 = vadd.f32 %v311_v9, %v3169_v52  ;;  %v313_v26 = vpop.f32.mrb[10].mxu1  ;;  %v272_v54 = vadd.f32 %v271_v50, %v3169_v52  ;;  %v273_v55 = vpop.f32.mrb[10].mxu0 }
 0x136   :  { %v314_v46 = vadd.f32 %v313_v26, %v3166_v51  ;;  %v315_v48 = vpop.f32.mrb[11].mxu1  ;;  %v274_v57 = vadd.f32 %v273_v55, %v3166_v51  ;;  %v275_v58 = vpop.f32.mrb[11].mxu0 }
 0x137   :  { %v316_v53 = vadd.f32 %v315_v48, %v3169_v52  ;;  %v276_v61 = vadd.f32 %v275_v58, %v3169_v52 }
 0x138   :  { %v3209_v56 = vpack.c.bf16 %v314_v46, %v310_v5  ;;  %v3215_v63 = vpack.c.bf16 %v274_v57, %v270_v34 }
 0x139   :  { %v3212_v60 = vpack.c.bf16 %v316_v53, %v312_v17  ;;  %v3217_v9 = vpack.c.bf16 %v276_v61, %v272_v54  ;;  %v120_v17 = vsub.s32 2, %v3156_v47  ;;  %v124_v54 = vsub.s32 3, %v3156_v47 }
 0x13a   :  { %3795 = vst [vmem:[#allocation23_spill] sm:$0xff] %v3209_v56 }
 0x13b   :  { %3796 = vst [vmem:[#allocation24_spill] sm:$0xff] %v3212_v60  ;;  %v319_v2 = vpop.f32.mrb[12].mxu1  ;;  %3797 = vst [vmem:[#allocation25_spill] sm:$0xff] %v3217_v9  ;;  %v279_v5 = vpop.f32.mrb[12].mxu0  ;;  %v3234_v56 = vrot.slane %v3162_v49, %v120_v17  ;;  %v3239_v47 = vrot.slane %v3162_v49, %v124_v54 }
 0x13c   :  { %v320_v26 = vadd.f32 %v319_v2, %v3166_v51  ;;  %v321_v23 = vpop.f32.mrb[13].mxu1  ;;  %v280_v53 = vadd.f32 %v279_v5, %v3166_v51  ;;  %v281_v58 = vpop.f32.mrb[13].mxu0 }
 0x13d   :  { %v322_v48 = vadd.f32 %v321_v23, %v3169_v52  ;;  %v323_v50 = vpop.f32.mrb[14].mxu1  ;;  %v282_v57 = vadd.f32 %v281_v58, %v3169_v52  ;;  %v283_v61 = vpop.f32.mrb[14].mxu0 }
 0x13e   :  { %v324_v46 = vadd.f32 %v323_v50, %v3166_v51  ;;  %v325_v55 = vpop.f32.mrb[15].mxu1  ;;  %v284_v23 = vadd.f32 %v283_v61, %v3166_v51  ;;  %v285_v0 = vpop.f32.mrb[15].mxu0  ;;  %v549_v51 = vunpack.c.l.bf16 %v3185_v20  ;;  %v553_v61 = vunpack.c.h.bf16 %v3185_v20 }
 0x13f   :  { %v326_v34 = vadd.f32 %v325_v55, %v3169_v52  ;;  %v286_v50 = vadd.f32 %v285_v0, %v3169_v52 }
 0x140   :  { %v3227_v2 = vpack.c.bf16 %v324_v46, %v320_v26  ;;  %v3236_v5 = vpack.c.bf16 %v284_v23, %v280_v53  ;;  %v548_v26 = vunpack.c.l.bf16 %v3183_v12 }
 0x141   :  { %v3230_v60 = vpack.c.bf16 %v326_v34, %v322_v48  ;;  %v3241_v58 = vpack.c.bf16 %v286_v50, %v282_v57  ;;  %v552_v34 = vunpack.c.h.bf16 %v3183_v12 }
 0x142   :  { %3798 = vst [vmem:[#allocation26_spill] sm:$0xff] %v3227_v2  ;;  %3800 = vst [vmem:[#allocation28_spill] sm:$0xff] %v3236_v5 }
 0x143   :  { %3799 = vst [vmem:[#allocation27_spill] sm:$0xff] %v3230_v60  ;;  %v362_v55 = vpop.f32.mrb[16].mxu1  ;;  %3801 = vst [vmem:[#allocation29_spill] sm:$0xff] %v3241_v58 }
 0x144   :  { %v364_v46 = vpop.f32.mrb[17].mxu1  ;;  %v363_v0 = vadd.f32 %v362_v55, %v3234_v56 }
 0x145   :  { %v366_v48 = vpop.f32.mrb[18].mxu1  ;;  %v751_v53 = vpop.f32.mrb[16].mxu0  ;;  %v365_v49 = vadd.f32 %v364_v46, %v3239_v47 }
 0x146   :  { %v367_v52 = vadd.f32 %v366_v48, %v3234_v56  ;;  %v368_v17 = vpop.f32.mrb[19].mxu1  ;;  %v803_v57 = vadd.f32 %v751_v53, %v548_v26  ;;  %v753_v23 = vpop.f32.mrb[17].mxu0 }
 0x147   :  { %v369_v54 = vadd.f32 %v368_v17, %v3239_v47  ;;  %v804_v60 = vadd.f32 %v753_v23, %v549_v51  ;;  %v755_v2 = vpop.f32.mrb[18].mxu0 }
 0x148   :  { %v3251_v50 = vpack.c.bf16 %v367_v52, %v363_v0  ;;  %v807_v12 = vadd.f32 %v755_v2, %v552_v34  ;;  %v757_v55 = vpop.f32.mrb[19].mxu0 }
 0x149   :  { %v3253_v62 = vpack.c.bf16 %v369_v54, %v365_v49  ;;  %v808_v59 = vadd.f32 %v757_v55, %v553_v61 }
 0x14b   :  { %v372_v48 = vpop.f32.mrb[20].mxu1  ;;  %v2266_v9 = vmul.f32 -1.442695, %v808_v59 }
 0x14c   :  { %v373_v6 = vadd.f32 %v372_v48, %v3234_v56  ;;  %v374_v3 = vpop.f32.mrb[21].mxu1 }
 0x14d   :  { %v375_v20 = vadd.f32 %v374_v3, %v3239_v47  ;;  %v376_v46 = vpop.f32.mrb[22].mxu1 }
 0x14e   :  { %v377_v17 = vadd.f32 %v376_v46, %v3234_v56  ;;  %v378_v26 = vpop.f32.mrb[23].mxu1 }
 0x14f   :  { %v379_v0 = vadd.f32 %v378_v26, %v3239_v47 }
 0x150   :  { %v3259_v52 = vpack.c.bf16 %v377_v17, %v373_v6 }
 0x151   :  { %v3261_v51 = vpack.c.bf16 %v379_v0, %v375_v20 }
 0x153   :  { %v382_v53 = vpop.f32.mrb[24].mxu1 }
 0x154   :  { %v383_v2 = vadd.f32 %v382_v53, %v3234_v56  ;;  %v384_v34 = vpop.f32.mrb[25].mxu1 }
 0x155   :  { %v385_v61 = vadd.f32 %v384_v34, %v3239_v47  ;;  %v386_v49 = vpop.f32.mrb[26].mxu1 }
 0x156   :  { %v387_v54 = vadd.f32 %v386_v49, %v3234_v56  ;;  %v388_v3 = vpop.f32.mrb[27].mxu1 }
 0x157   :  { %v389_v23 = vadd.f32 %v388_v3, %v3239_v47 }
 0x158   :  { %v3267_v55 = vpack.c.bf16 %v387_v54, %v383_v2 }
 0x159   :  { %v3269_v48 = vpack.c.bf16 %v389_v23, %v385_v61 }
 0x15b   :  { %3802 = vst [vmem:[#allocation30_spill] sm:$0xff] %v3269_v48  ;;  %v392_v6 = vpop.f32.mrb[28].mxu1 }
 0x15c   :  { %v393_v20 = vadd.f32 %v392_v6, %v3234_v56  ;;  %v394_v46 = vpop.f32.mrb[29].mxu1 }
 0x15d   :  { %v395_v17 = vadd.f32 %v394_v46, %v3239_v47  ;;  %v396_v26 = vpop.f32.mrb[30].mxu1 }
 0x15e   :  { %v397_v0 = vadd.f32 %v396_v26, %v3234_v56  ;;  %v398_v53 = vpop.f32.mrb[31].mxu1 }
 0x15f   :  { %v399_v34 = vadd.f32 %v398_v53, %v3239_v47 }
 0x160   :  { %v3275_v49 = vpack.c.bf16 %v397_v0, %v393_v20 }
 0x161   :  { %v3277_v58 = vpack.c.bf16 %v399_v34, %v395_v17 }
 0x162   :  { %3803 = vst [vmem:[#allocation31_spill] sm:$0xff] %v3275_v49  ;;  %v2265_v49 = vmul.f32 -1.442695, %v804_v60 }
 0x163   :  { %3804 = vst [vmem:[#allocation32_spill] sm:$0xff] %v3277_v58  ;;  %v402_v2 = vpop.f32.mrb[32].mxu1 }
 0x164   :  { %v403_v61 = vadd.f32 %v402_v2, %v3234_v56  ;;  %v404_v54 = vpop.f32.mrb[33].mxu1  ;;  %v2263_v2 = vmul.f32 -1.442695, %v803_v57 }
 0x165   :  { %v405_v3 = vadd.f32 %v404_v54, %v3239_v47  ;;  %v406_v23 = vpop.f32.mrb[34].mxu1 }
 0x166   :  { %v407_v6 = vadd.f32 %v406_v23, %v3234_v56  ;;  %v408_v46 = vpop.f32.mrb[35].mxu1  ;;  %2453 = vpow2.f32 %v2263_v2 }
 0x167   :  { %v409_v5 = vadd.f32 %v408_v46, %v3239_v47  ;;  %2455 = vpow2.f32 %v2265_v49 }
 0x168   :  { %v3283_v26 = vpack.c.bf16 %v407_v6, %v403_v61  ;;  %2457 = vpow2.f32 %v2266_v9 }
 0x169   :  { %v3285_v48 = vpack.c.bf16 %v409_v5, %v405_v3  ;;  %v2264_v5 = vmul.f32 -1.442695, %v807_v12 }
 0x16b   :  { %v412_v20 = vpop.f32.mrb[36].mxu1  ;;  %2459 = vpow2.f32 %v2264_v5 }
 0x16c   :  { %v413_v17 = vadd.f32 %v412_v20, %v3234_v56  ;;  %v414_v0 = vpop.f32.mrb[37].mxu1 }
 0x16d   :  { %v415_v53 = vadd.f32 %v414_v0, %v3239_v47  ;;  %v416_v34 = vpop.f32.mrb[38].mxu1 }
 0x16e   :  { %v417_v54 = vadd.f32 %v416_v34, %v3234_v56  ;;  %v418_v58 = vpop.f32.mrb[39].mxu1 }
 0x16f   :  { %v419_v23 = vadd.f32 %v418_v58, %v3239_v47 }
 0x170   :  { %v3291_v46 = vpack.c.bf16 %v417_v54, %v413_v17  ;;  %v2454_v49 = vpop.eup %2453 }
 0x171   :  { %v3293_v61 = vpack.c.bf16 %v419_v23, %v415_v53  ;;  %v2456_v2 = vpop.eup %2455 }
 0x173   :  { %3805 = vst [vmem:[#allocation33_spill] sm:$0xff] %v3293_v61  ;;  %v422_v3 = vpop.f32.mrb[40].mxu1  ;;  %v551_v61 = vunpack.c.l.bf16 %v3253_v62 }
 0x174   :  { %v423_v6 = vadd.f32 %v422_v3, %v3234_v56  ;;  %v424_v20 = vpop.f32.mrb[41].mxu1  ;;  %v2458_v3 = vpop.eup %2457 }
 0x175   :  { %v425_v57 = vadd.f32 %v424_v20, %v3239_v47  ;;  %v426_v0 = vpop.f32.mrb[42].mxu1 }
 0x176   :  { %v427_v60 = vadd.f32 %v426_v0, %v3234_v56  ;;  %v428_v58 = vpop.f32.mrb[43].mxu1  ;;  %v817_v0 = vadd.f32 1.0, %v2454_v49  ;;  %v554_v49 = vunpack.c.h.bf16 %v3251_v50 }
 0x177   :  { %v429_v59 = vadd.f32 %v428_v58, %v3239_v47 }
 0x178   :  { %v3299_v17 = vpack.c.bf16 %v427_v60, %v423_v6  ;;  %v2460_v6 = vpop.eup %2459  ;;  %v829_v60 = vadd.f32 1.0, %v2456_v2  ;;  %2461 = vrcp.f32 %v817_v0 }
 0x179   :  { %v3301_v53 = vpack.c.bf16 %v429_v59, %v425_v57  ;;  %v830_v59 = vadd.f32 1.0, %v2458_v3 }
 0x17a   :  { %3806 = vst [vmem:[#allocation34_spill] sm:$0xff] %v3299_v17  ;;  %v818_v17 = vadd.f32 1.0, %v2460_v6  ;;  %2463 = vrcp.f32 %v829_v60 }
 0x17b   :  { %3807 = vst [vmem:[#allocation35_spill] sm:$0xff] %v3301_v53  ;;  %v432_v12 = vpop.f32.mrb[44].mxu1  ;;  %2465 = vrcp.f32 %v830_v59 }
 0x17c   :  { %v433_v9 = vadd.f32 %v432_v12, %v3234_v56  ;;  %v434_v34 = vpop.f32.mrb[45].mxu1  ;;  %v550_v12 = vunpack.c.l.bf16 %v3251_v50 }
 0x17d   :  { %v435_v54 = vadd.f32 %v434_v34, %v3239_v47  ;;  %v436_v23 = vpop.f32.mrb[46].mxu1 }
 0x17e   :  { %v437_v5 = vadd.f32 %v436_v23, %v3234_v56  ;;  %v438_v20 = vpop.f32.mrb[47].mxu1 }
 0x17f   :  { %v439_v58 = vadd.f32 %v438_v20, %v3239_v47 }
 0x180   :  { %v3307_v57 = vpack.c.bf16 %v437_v5, %v433_v9  ;;  %v555_v9 = vunpack.c.h.bf16 %v3253_v62 }
 0x181   :  { %v3309_v53 = vpack.c.bf16 %v439_v58, %v435_v54 }
 0x182   :  { %3808 = vst [vmem:[#allocation36_spill] sm:$0xff] %v3307_v57  ;;  %v2462_v58 = vpop.eup %2461 }
 0x183   :  { %3809 = vst [vmem:[#allocation37_spill] sm:$0xff] %v3309_v53  ;;  %v794_v34 = vpop.f32.mrb[48].mxu1 }
 0x184   :  { %v805_v56 = vadd.f32 %v794_v34, %v550_v12  ;;  %v796_v23 = vpop.f32.mrb[49].mxu1  ;;  %v2464_v6 = vpop.eup %2463 }
 0x185   :  { %v806_v47 = vadd.f32 %v796_v23, %v551_v61  ;;  %v798_v2 = vpop.f32.mrb[50].mxu1  ;;  %v2466_v60 = vpop.eup %2465  ;;  %v849_v59 = vmul.f32 0.0, %v2464_v6 }
 0x186   :  { %2467 = vtanh.f32 %v805_v56  ;;  %v809_v54 = vadd.f32 %v798_v2, %v554_v49  ;;  %v800_v3 = vpop.f32.mrb[51].mxu1  ;;  %v850_v62 = vmul.f32 0.0, %v2466_v60  ;;  %v3811_v60 = vmov 0  }
 0x187   :  { %2469 = vrcp.f32 %v818_v17  ;;  %v2267_v5 = vmul.f32 -1.442695, %v806_v47  ;;  %v810_v20 = vadd.f32 %v800_v3, %v555_v9 }
 0x188   :  { %2471 = vtanh.f32 %v809_v54 }
 0x189   :  { %2473 = vpow2.f32 %v2267_v5  ;;  %v2268_v0 = vmul.f32 -1.442695, %v810_v20 }
 0x18b   :  { %2475 = vpow2.f32 %v2268_v0 }
 0x190   :  { %v2468_v12 = vpop.eup %2467 }
 0x191   :  { %v2470_v50 = vpop.eup %2469  ;;  %v851_v61 = vmul.f32 %v2468_v12, %v2462_v58  ;;  %v872_v12 = vunpack.c.h.bf16 %v3199_v1 }
 0x192   :  { %v2472_v34 = vpop.eup %2471 }
 0x193   :  { %v2474_v23 = vpop.eup %2473  ;;  %v3315_v56 = vadd.f32 %v851_v61, %v849_v59  ;;  %v852_v49 = vmul.f32 %v2472_v34, %v2470_v50  ;;  %v873_v34 = vunpack.c.h.bf16 %v3201_v4 }
 0x194   :  { %v843_v17 = vadd.f32 1.0, %v2474_v23  ;;  %v875_v23 = vunpack.c.h.bf16 %v3261_v51 }
 0x195   :  { %v2476_v47 = vpop.eup %2475  ;;  %2477 = vtanh.f32 %v3315_v56  ;;  %v3318_v2 = vadd.f32 %v852_v49, %v850_v62 }
 0x196   :  { %2479 = vrcp.f32 %v843_v17  ;;  %v844_v9 = vadd.f32 1.0, %v2476_v47 }
 0x197   :  { %2481 = vtanh.f32 %v3318_v2 }
 0x198   :  { %2483 = vrcp.f32 %v844_v9 }
 0x19f   :  { %v2478_v54 = vpop.eup %2477 }
 0x1a0   :  { %v2480_v3 = vpop.eup %2479 }
 0x1a1   :  { %v2482_v5 = vpop.eup %2481  ;;  %v857_v0 = vmul.f32 %v2480_v3, %v2478_v54 }
 0x1a2   :  { %v2484_v20 = vpop.eup %2483 }
 0x1a3   :  { %v858_v58 = vmul.f32 %v2484_v20, %v2482_v5 }
 0x1a5   :  { %v3321_v6 = vpack.c.bf16 %v858_v58, %v857_v0 }
 0x1a7   :  { %3810 = vst [vmem:[#allocation38_spill] sm:$0xff] %v3321_v6  ;;  %909 = vmatmul.mubr.bf16.vlgmr.msra.gmra.mrb[20].mxu0 %v3321_v6  ;;  %952 = vmatmul.mubr.bf16.vlgmr.msra.gmra.mrb[52].mxu1 %v3321_v6 }
 0x1a8   :  { %1037 = vmatpush1.bf16.msra.mxu0 %v2983_v8  ;;  %1080 = vmatpush1.bf16.msra.mxu1 %v3051_v30  ;;  %v868_v8 = vunpack.c.l.bf16 %v3199_v1 }
 0x1a9   :  { %1038 = vmatprep.subr.bf16.mxu0 %v2989_v10  ;;  %1081 = vmatprep.subr.bf16.mxu1 %v3054_v31  ;;  %v870_v10 = vunpack.c.l.bf16 %v3259_v52 }
 0x1aa   :  { %1068 = vmatprep.mubr.bf16.mxu0 %v3811_v60  ;;  %1111 = vmatprep.mubr.bf16.mxu1 %v3811_v60 }
 0x1ac   :  { %1039 = vmatpush1.bf16.msra.mxu0 %v2993_v11  ;;  %1082 = vmatpush1.bf16.msra.mxu1 %v3062_v32 }
 0x1ad   :  { %1040 = vmatprep.subr.bf16.mxu0 %v2996_v13  ;;  %1083 = vmatprep.subr.bf16.mxu1 %v3065_v33 }
 0x1b0   :  { %1041 = vmatpush1.bf16.msra.mxu0 %v3003_v15  ;;  %1084 = vmatpush1.bf16.msra.mxu1 %v3071_v35  ;;  %v869_v15 = vunpack.c.l.bf16 %v3201_v4 }
 0x1b1   :  { %1042 = vmatprep.subr.bf16.mxu0 %v3007_v16  ;;  %1085 = vmatprep.subr.bf16.mxu1 %v3075_v36  ;;  %v871_v16 = vunpack.c.l.bf16 %v3261_v51 }
 0x1b4   :  { %1043 = vmatpush1.bf16.msra.mxu0 %v3015_v18  ;;  %1086 = vmatpush1.bf16.msra.mxu1 %v3081_v37 }
 0x1b5   :  { %1044 = vmatprep.subr.bf16.mxu0 %v3018_v19  ;;  %1087 = vmatprep.subr.bf16.mxu1 %v3084_v38 }
 0x1b8   :  { %1045 = vmatpush1.bf16.msra.mxu0 %v3023_v21  ;;  %1088 = vmatpush1.bf16.msra.mxu1 %v3089_v39 }
 0x1b9   :  { %1046 = vmatprep.subr.bf16.mxu0 %v3027_v22  ;;  %1089 = vmatprep.subr.bf16.mxu1 %v3093_v40 }
 0x1bc   :  { %1047 = vmatpush1.bf16.msra.mxu0 %v3034_v24  ;;  %1090 = vmatpush1.bf16.msra.mxu1 %v3099_v41 }
 0x1bd   :  { %1048 = vmatprep.subr.bf16.mxu0 %v3037_v25  ;;  %1091 = vmatprep.subr.bf16.mxu1 %v3102_v42 }
 0x1c0   :  { %1049 = vmatpush1.bf16.msra.mxu0 %v3042_v27  ;;  %1092 = vmatpush1.bf16.msra.mxu1 %v3107_v43 }
 0x1c1   :  { %1050 = vmatprep.subr.bf16.mxu0 %v3046_v28  ;;  %1093 = vmatprep.subr.bf16.mxu1 %v3111_v44 }
 0x1c4   :  { %1051 = vmatpush1.bf16.msra.mxu0 %v3049_v29  ;;  %1094 = vmatpush1.bf16.msra.mxu1 %v3117_v45 }
 0x1c5   :  { %1196 = vmatprep.subr.bf16.mxu0 %v2981_v7  ;;  %1239 = vmatprep.subr.bf16.mxu1 %v2998_v14  ;;  %v874_v7 = vunpack.c.h.bf16 %v3259_v52 }
 0x27a   :  { %v910_v11 = vpop.f32.mrb[20].mxu0  ;;  %v953_v13 = vpop.f32.mrb[52].mxu1 }
 0x27b   :  { %v962_v18 = vadd.f32 %v910_v11, %v868_v8  ;;  %v964_v19 = vadd.f32 %v953_v13, %v870_v10  ;;  %v912_v21 = vpop.f32.mrb[21].mxu0  ;;  %v955_v22 = vpop.f32.mrb[53].mxu1 }
 0x27c   :  { %v963_v50 = vadd.f32 %v912_v21, %v869_v15  ;;  %v965_v14 = vadd.f32 %v955_v22, %v871_v16  ;;  %v914_v59 = vpop.f32.mrb[22].mxu0  ;;  %v957_v61 = vpop.f32.mrb[54].mxu1 }
 0x27d   :  { %v2269_v62 = vmul.f32 -1.442695, %v962_v18  ;;  %v966_v49 = vadd.f32 %v914_v59, %v872_v12  ;;  %v968_v17 = vadd.f32 %v957_v61, %v874_v7  ;;  %v916_v47 = vpop.f32.mrb[23].mxu0  ;;  %v959_v9 = vpop.f32.mrb[55].mxu1 }
 0x27e   :  { %v2271_v54 = vmul.f32 -1.442695, %v963_v50  ;;  %v967_v3 = vadd.f32 %v916_v47, %v873_v34  ;;  %v969_v5 = vadd.f32 %v959_v9, %v875_v23  ;;  %v2273_v20 = vmul.f32 -1.442695, %v965_v14 }
 0x27f   :  { %2485 = vpow2.f32 %v2269_v62  ;;  %v2270_v1 = vmul.f32 -1.442695, %v966_v49 }
 0x280   :  { %2487 = vpow2.f32 %v2271_v54  ;;  %v2272_v52 = vmul.f32 -1.442695, %v967_v3  ;;  %v2274_v51 = vmul.f32 -1.442695, %v969_v5 }
 0x281   :  { %2489 = vpow2.f32 %v2270_v1 }
 0x282   :  { %2491 = vpow2.f32 %v2272_v52  ;;  %v3383_v52 = vld [vmem:[#allocation11 + $0x24] ss:$16 sps:$4 sm:$0xff]  }
 0x283   :  { %2493 = vtanh.f32 %v964_v19 }
 0x284   :  { %2495 = vpow2.f32 %v2273_v20  ;;  %v3389_v20 = vld [vmem:[#allocation11 + $0x20] ss:$16 sps:$4 sm:$0xff]  }
 0x285   :  { %2497 = vtanh.f32 %v968_v17 }
 0x289   :  { %v2486_v0 = vpop.eup %2485 }
 0x28a   :  { %v2488_v4 = vpop.eup %2487  ;;  %v976_v58 = vadd.f32 1.0, %v2486_v0  ;;  %v3393_v0 = vld [vmem:[#allocation11 + $0x44] ss:$16 sps:$4 sm:$0xff]  }
 0x28b   :  { %v988_v8 = vadd.f32 1.0, %v2488_v4  ;;  %v2490_v10 = vpop.eup %2489  ;;  %v3405_v4 = vld [vmem:[#allocation11 + $0x60] ss:$16 sps:$4 sm:$0xff]  }
 0x28c   :  { %2499 = vrcp.f32 %v976_v58  ;;  %v977_v11 = vadd.f32 1.0, %v2490_v10  ;;  %v2492_v13 = vpop.eup %2491  ;;  %v1034_v58 = vunpack.c.h.bf16 %v3267_v55 }
 0x28d   :  { %2501 = vrcp.f32 %v988_v8  ;;  %v989_v15 = vadd.f32 1.0, %v2492_v13  ;;  %v2494_v16 = vpop.eup %2493 }
 0x28e   :  { %2503 = vpow2.f32 %v2274_v51  ;;  %v2496_v18 = vpop.eup %2495 }
 0x28f   :  { %2505 = vrcp.f32 %v977_v11  ;;  %v2498_v21 = vpop.eup %2497  ;;  %v1002_v59 = vadd.f32 1.0, %v2496_v18 }
 0x290   :  { %2507 = vrcp.f32 %v989_v15 }
 0x291   :  { %2509 = vrcp.f32 %v1002_v59 }
 0x296   :  { %v2500_v22 = vpop.eup %2499 }
 0x297   :  { %v2502_v19 = vpop.eup %2501  ;;  %v1010_v12 = vmul.f32 %v2500_v22, %v2494_v16 }
 0x298   :  { %v2504_v7 = vpop.eup %2503  ;;  %v1008_v50 = vmul.f32 %v2502_v19, %v3315_v56 }
 0x299   :  { %v2506_v14 = vpop.eup %2505  ;;  %v1003_v62 = vadd.f32 1.0, %v2504_v7 }
 0x29a   :  { %v3368_v61 = vadd.f32 %v1010_v12, %v1008_v50  ;;  %v1011_v34 = vmul.f32 %v2506_v14, %v2498_v21  ;;  %v2508_v23 = vpop.eup %2507 }
 0x29b   :  { %v1009_v49 = vmul.f32 %v2508_v23, %v3318_v2  ;;  %v2510_v47 = vpop.eup %2509  ;;  %v3379_v2 = vld [vmem:[#allocation11] ss:$16 sps:$4 sm:$0xff]  }
 0x29c   :  { %2511 = vtanh.f32 %v3368_v61 }
 0x29d   :  { %v3372_v17 = vadd.f32 %v1011_v34, %v1009_v49  ;;  %2513 = vrcp.f32 %v1003_v62 }
 0x29f   :  { %2515 = vtanh.f32 %v3372_v17 }
 0x2a6   :  { %v2512_v9 = vpop.eup %2511 }
 0x2a7   :  { %v2514_v56 = vpop.eup %2513  ;;  %v1016_v3 = vmul.f32 %v2512_v9, %v2510_v47 }
 0x2a9   :  { %v2516_v54 = vpop.eup %2515 }
 0x2aa   :  { %v1017_v5 = vmul.f32 %v2516_v54, %v2514_v56 }
 0x2ac   :  { %v3375_v1 = vpack.c.bf16 %v1017_v5, %v1016_v3 }
 0x2ae   :  { %3812 = vst [vmem:[#allocation39_spill] sm:$0xff] %v3375_v1  ;;  %1069 = vmatmul.mubr.bf16.vlgmr.msra.gmra.mrb[24].mxu0 %v3375_v1  ;;  %1112 = vmatmul.mubr.bf16.vlgmr.msra.gmra.mrb[56].mxu1 %v3375_v1 }
 0x2af   :  { %1197 = vmatpush1.bf16.msra.mxu0 %v3379_v2  ;;  %1240 = vmatpush1.bf16.msra.mxu1 %v3051_v30  ;;  %v3397_v30 = vld [vmem:[#allocation11 + $0x40] ss:$16 sps:$4 sm:$0xff]  }
 0x2b0   :  { %1198 = vmatprep.subr.bf16.mxu0 %v3383_v52  ;;  %1241 = vmatprep.subr.bf16.mxu1 %v3054_v31  ;;  %v3401_v31 = vld [vmem:[#allocation11 + $0x64] ss:$16 sps:$4 sm:$0xff]  }
 0x2b1   :  { %1228 = vmatprep.mubr.bf16.mxu0 %v3811_v60  ;;  %1271 = vmatprep.mubr.bf16.mxu1 %v3811_v60 }
 0x2b3   :  { %1199 = vmatpush1.bf16.msra.mxu0 %v3389_v20  ;;  %1242 = vmatpush1.bf16.msra.mxu1 %v3062_v32  ;;  %v3409_v32 = vld [vmem:[#allocation11 + $0x84] ss:$16 sps:$4 sm:$0xff]  }
 0x2b4   :  { %1200 = vmatprep.subr.bf16.mxu0 %v3393_v0  ;;  %1243 = vmatprep.subr.bf16.mxu1 %v3065_v33  ;;  %v3413_v33 = vld [vmem:[#allocation11 + $0x80] ss:$16 sps:$4 sm:$0xff]  }
 0x2b7   :  { %1201 = vmatpush1.bf16.msra.mxu0 %v3397_v30  ;;  %1244 = vmatpush1.bf16.msra.mxu1 %v3071_v35  ;;  %v3417_v35 = vld [vmem:[#allocation11 + $0xa4] ss:$16 sps:$4 sm:$0xff]  }
 0x2b8   :  { %1202 = vmatprep.subr.bf16.mxu0 %v3401_v31  ;;  %1245 = vmatprep.subr.bf16.mxu1 %v3075_v36  ;;  %v3431_v36 = vld [vmem:[#allocation11 + $0x4] ss:$16 sps:$4 sm:$0xff]  }
 0x2bb   :  { %1203 = vmatpush1.bf16.msra.mxu0 %v3405_v4  ;;  %1246 = vmatpush1.bf16.msra.mxu1 %v3081_v37 }
 0x2bc   :  { %1204 = vmatprep.subr.bf16.mxu0 %v3409_v32  ;;  %1247 = vmatprep.subr.bf16.mxu1 %v3084_v38  ;;  %v3813_v38 = vld [vmem:[#allocation25_spill] sm:$0xff] }
 0x2bd   :  { %v1033_v13 = vunpack.c.h.bf16 %v3813_v38 }
 0x2bf   :  { %1205 = vmatpush1.bf16.msra.mxu0 %v3413_v33  ;;  %1248 = vmatpush1.bf16.msra.mxu1 %v3089_v39  ;;  %v1029_v39 = vunpack.c.l.bf16 %v3813_v38 }
 0x2c0   :  { %1206 = vmatprep.subr.bf16.mxu0 %v3417_v35  ;;  %1249 = vmatprep.subr.bf16.mxu1 %v3093_v40  ;;  %v3814_v40 = vld [vmem:[#allocation30_spill] sm:$0xff] }
 0x2c1   :  { %v1035_v15 = vunpack.c.h.bf16 %v3814_v40 }
 0x2c3   :  { %1207 = vmatpush1.bf16.msra.mxu0 %v3034_v24  ;;  %1250 = vmatpush1.bf16.msra.mxu1 %v3099_v41  ;;  %v3434_v24 = vld [vmem:[#allocation11 + $0xc] ss:$16 sps:$4 sm:$0xff]  }
 0x2c4   :  { %1208 = vmatprep.subr.bf16.mxu0 %v3037_v25  ;;  %1251 = vmatprep.subr.bf16.mxu1 %v3102_v42  ;;  %v1028_v25 = vunpack.c.l.bf16 %v3215_v63 }
 0x2c7   :  { %1209 = vmatpush1.bf16.msra.mxu0 %v3042_v27  ;;  %1252 = vmatpush1.bf16.msra.mxu1 %v3107_v43  ;;  %v1030_v27 = vunpack.c.l.bf16 %v3267_v55 }
 0x2c8   :  { %1210 = vmatprep.subr.bf16.mxu0 %v3046_v28  ;;  %1253 = vmatprep.subr.bf16.mxu1 %v3111_v44 }
 0x2cb   :  { %1211 = vmatpush1.bf16.msra.mxu0 %v3049_v29  ;;  %1254 = vmatpush1.bf16.msra.mxu1 %v3117_v45  ;;  %v1031_v29 = vunpack.c.l.bf16 %v3814_v40  ;;  %v1032_v45 = vunpack.c.h.bf16 %v3215_v63 }
 0x2cc   :  { %1356 = vmatprep.subr.bf16.mxu0 %v3431_v36  ;;  %1399 = vmatprep.subr.bf16.mxu1 %v3434_v24 }
 0x381   :  { %v1070_v37 = vpop.f32.mrb[24].mxu0  ;;  %v1113_v28 = vpop.f32.mrb[56].mxu1 }
 0x382   :  { %v1122_v41 = vadd.f32 %v1070_v37, %v1028_v25  ;;  %v1124_v42 = vadd.f32 %v1113_v28, %v1030_v27  ;;  %v1072_v43 = vpop.f32.mrb[25].mxu0  ;;  %v1115_v44 = vpop.f32.mrb[57].mxu1 }
 0x383   :  { %v1123_v51 = vadd.f32 %v1072_v43, %v1029_v39  ;;  %v1125_v8 = vadd.f32 %v1115_v44, %v1031_v29  ;;  %v1074_v10 = vpop.f32.mrb[26].mxu0  ;;  %v1117_v11 = vpop.f32.mrb[58].mxu1 }
 0x384   :  { %v2275_v16 = vmul.f32 -1.442695, %v1122_v41  ;;  %v1126_v18 = vadd.f32 %v1074_v10, %v1032_v45  ;;  %v1128_v21 = vadd.f32 %v1117_v11, %v1034_v58  ;;  %v1076_v22 = vpop.f32.mrb[27].mxu0  ;;  %v1119_v19 = vpop.f32.mrb[59].mxu1 }
 0x385   :  { %v2277_v12 = vmul.f32 -1.442695, %v1123_v51  ;;  %v1127_v7 = vadd.f32 %v1076_v22, %v1033_v13  ;;  %v1129_v50 = vadd.f32 %v1119_v19, %v1035_v15  ;;  %v2279_v14 = vmul.f32 -1.442695, %v1125_v8  ;;  %v3476_v22 = vld [vmem:[#allocation11 + $0x48] ss:$16 sps:$4 sm:$0xff]  }
 0x386   :  { %2517 = vpow2.f32 %v2275_v16  ;;  %v2276_v63 = vmul.f32 -1.442695, %v1126_v18  ;;  %v3462_v16 = vld [vmem:[#allocation11 + $0x2c] ss:$16 sps:$4 sm:$0xff]   ;;  %v3468_v18 = vld [vmem:[#allocation11 + $0x28] ss:$16 sps:$4 sm:$0xff]  }
 0x387   :  { %2519 = vpow2.f32 %v2277_v12  ;;  %v2278_v55 = vmul.f32 -1.442695, %v1127_v7  ;;  %v2280_v62 = vmul.f32 -1.442695, %v1129_v50  ;;  %v3480_v19 = vld [vmem:[#allocation11 + $0x6c] ss:$16 sps:$4 sm:$0xff]  }
 0x388   :  { %2521 = vpow2.f32 %v2276_v63  ;;  %v3484_v12 = vld [vmem:[#allocation11 + $0x68] ss:$16 sps:$4 sm:$0xff]   ;;  %v3488_v7 = vld [vmem:[#allocation11 + $0x8c] ss:$16 sps:$4 sm:$0xff]  }
 0x389   :  { %2523 = vpow2.f32 %v2278_v55  ;;  %v3492_v50 = vld [vmem:[#allocation11 + $0x88] ss:$16 sps:$4 sm:$0xff]   ;;  %v3496_v63 = vld [vmem:[#allocation11 + $0xac] ss:$16 sps:$4 sm:$0xff]   ;;  %v3499_v55 = vld [vmem:[#allocation11 + $0xa0] ss:$16 sps:$4 sm:$0xff]  }
 0x38a   :  { %2525 = vtanh.f32 %v1124_v42 }
 0x38b   :  { %2527 = vpow2.f32 %v2279_v14  ;;  %v3502_v14 = vld [vmem:[#allocation11 + $0xa8] ss:$16 sps:$4 sm:$0xff]  }
 0x38c   :  { %2529 = vtanh.f32 %v1128_v21  ;;  %v3472_v21 = vld [vmem:[#allocation11 + $0x4c] ss:$16 sps:$4 sm:$0xff]  }
 0x390   :  { %v2518_v59 = vpop.eup %2517 }
 0x391   :  { %v2520_v34 = vpop.eup %2519  ;;  %v1136_v23 = vadd.f32 1.0, %v2518_v59  ;;  %v3505_v59 = vld [vmem:[#allocation11 + $0xc4] ss:$16 sps:$4 sm:$0xff]  }
 0x392   :  { %v1148_v49 = vadd.f32 1.0, %v2520_v34  ;;  %v2522_v47 = vpop.eup %2521  ;;  %v3508_v34 = vld [vmem:[#allocation11 + $0xcc] ss:$16 sps:$4 sm:$0xff]  }
 0x393   :  { %2531 = vrcp.f32 %v1136_v23  ;;  %v1137_v9 = vadd.f32 1.0, %v2522_v47  ;;  %v2524_v56 = vpop.eup %2523  ;;  %v3511_v23 = vld [vmem:[#allocation11 + $0xc0] ss:$16 sps:$4 sm:$0xff]   ;;  %v3520_v47 = vld [vmem:[#allocation11 + $0xec] ss:$16 sps:$4 sm:$0xff]  }
 0x394   :  { %2533 = vrcp.f32 %v1148_v49  ;;  %v1149_v54 = vadd.f32 1.0, %v2524_v56  ;;  %v2526_v3 = vpop.eup %2525  ;;  %v3517_v49 = vld [vmem:[#allocation11 + $0xe4] ss:$16 sps:$4 sm:$0xff]   ;;  %v3526_v56 = vld [vmem:[#allocation11 + $0xe8] ss:$16 sps:$4 sm:$0xff]  }
 0x395   :  { %2535 = vpow2.f32 %v2280_v62  ;;  %v2528_v5 = vpop.eup %2527  ;;  %v3514_v62 = vld [vmem:[#allocation11 + $0xc8] ss:$16 sps:$4 sm:$0xff]  }
 0x396   :  { %2537 = vrcp.f32 %v1137_v9  ;;  %v2530_v25 = vpop.eup %2529  ;;  %v1162_v29 = vadd.f32 1.0, %v2528_v5  ;;  %v3523_v9 = vld [vmem:[#allocation11 + $0xe0] ss:$16 sps:$4 sm:$0xff]  }
 0x397   :  { %2539 = vrcp.f32 %v1149_v54  ;;  %v3816_v54 = vld [vmem:[#allocation28_spill] sm:$0xff]  ;;  %v3817_v5 = vld [vmem:[#allocation31_spill] sm:$0xff] }
 0x398   :  { %2541 = vrcp.f32 %v1162_v29 }
 0x39d   :  { %v2532_v27 = vpop.eup %2531 }
 0x39e   :  { %v2534_v37 = vpop.eup %2533  ;;  %v1170_v28 = vmul.f32 %v2532_v27, %v2526_v3  ;;  %v1188_v3 = vunpack.c.l.bf16 %v3816_v54 }
 0x39f   :  { %v2536_v38 = vpop.eup %2535  ;;  %v1168_v39 = vmul.f32 %v2534_v37, %v3368_v61 }
 0x3a0   :  { %v2538_v40 = vpop.eup %2537  ;;  %v1163_v44 = vadd.f32 1.0, %v2536_v38 }
 0x3a1   :  { %v3446_v41 = vadd.f32 %v1170_v28, %v1168_v39  ;;  %v1171_v42 = vmul.f32 %v2538_v40, %v2530_v25  ;;  %v2540_v43 = vpop.eup %2539  ;;  %v1190_v25 = vunpack.c.l.bf16 %v3817_v5  ;;  %v3818_v28 = vld [vmem:[#allocation29_spill] sm:$0xff]  ;;  %v3819_v39 = vld [vmem:[#allocation32_spill] sm:$0xff] }
 0x3a2   :  { %v1169_v45 = vmul.f32 %v2540_v43, %v3372_v17  ;;  %v2542_v51 = vpop.eup %2541  ;;  %v3458_v17 = vld [vmem:[#allocation11 + $0x8] ss:$16 sps:$4 sm:$0xff]   ;;  %v1189_v38 = vunpack.c.l.bf16 %v3818_v28  ;;  %v1191_v40 = vunpack.c.l.bf16 %v3819_v39  ;;  %v1195_v53 = vunpack.c.h.bf16 %v3819_v39 }
 0x3a3   :  { %2543 = vtanh.f32 %v3446_v41 }
 0x3a4   :  { %v3450_v58 = vadd.f32 %v1171_v42, %v1169_v45  ;;  %2545 = vrcp.f32 %v1163_v44  ;;  %v1192_v45 = vunpack.c.h.bf16 %v3816_v54 }
 0x3a6   :  { %2547 = vtanh.f32 %v3450_v58 }
 0x3ad   :  { %v2544_v8 = vpop.eup %2543 }
 0x3ae   :  { %v2546_v61 = vpop.eup %2545  ;;  %v1176_v11 = vmul.f32 %v2544_v8, %v2542_v51  ;;  %v1194_v51 = vunpack.c.h.bf16 %v3817_v5 }
 0x3b0   :  { %v2548_v10 = vpop.eup %2547 }
 0x3b1   :  { %v1177_v13 = vmul.f32 %v2548_v10, %v2546_v61 }
 0x3b3   :  { %v3453_v15 = vpack.c.bf16 %v1177_v13, %v1176_v11  ;;  %v1193_v13 = vunpack.c.h.bf16 %v3818_v28 }
 0x3b5   :  { %3815 = vst [vmem:[#allocation25_spill] sm:$0xff] %v3453_v15  ;;  %1229 = vmatmul.mubr.bf16.vlgmr.msra.gmra.mrb[28].mxu0 %v3453_v15  ;;  %1272 = vmatmul.mubr.bf16.vlgmr.msra.gmra.mrb[60].mxu1 %v3453_v15 }
 0x3b6   :  { %1357 = vmatpush1.bf16.msra.mxu0 %v3379_v2  ;;  %1400 = vmatpush1.bf16.msra.mxu1 %v3458_v17 }
 0x3b7   :  { %1358 = vmatprep.subr.bf16.mxu0 %v3383_v52  ;;  %1401 = vmatprep.subr.bf16.mxu1 %v3462_v16 }
 0x3b8   :  { %1388 = vmatprep.mubr.bf16.mxu0 %v3811_v60  ;;  %1431 = vmatprep.mubr.bf16.mxu1 %v3811_v60 }
 0x3ba   :  { %1359 = vmatpush1.bf16.msra.mxu0 %v3389_v20  ;;  %1402 = vmatpush1.bf16.msra.mxu1 %v3468_v18 }
 0x3bb   :  { %1360 = vmatprep.subr.bf16.mxu0 %v3393_v0  ;;  %1403 = vmatprep.subr.bf16.mxu1 %v3472_v21 }
 0x3be   :  { %1361 = vmatpush1.bf16.msra.mxu0 %v3397_v30  ;;  %1404 = vmatpush1.bf16.msra.mxu1 %v3476_v22 }
 0x3bf   :  { %1362 = vmatprep.subr.bf16.mxu0 %v3401_v31  ;;  %1405 = vmatprep.subr.bf16.mxu1 %v3480_v19 }
 0x3c2   :  { %1363 = vmatpush1.bf16.msra.mxu0 %v3405_v4  ;;  %1406 = vmatpush1.bf16.msra.mxu1 %v3484_v12 }
 0x3c3   :  { %1364 = vmatprep.subr.bf16.mxu0 %v3409_v32  ;;  %1407 = vmatprep.subr.bf16.mxu1 %v3488_v7 }
 0x3c6   :  { %1365 = vmatpush1.bf16.msra.mxu0 %v3413_v33  ;;  %1408 = vmatpush1.bf16.msra.mxu1 %v3492_v50 }
 0x3c7   :  { %1366 = vmatprep.subr.bf16.mxu0 %v3417_v35  ;;  %1409 = vmatprep.subr.bf16.mxu1 %v3496_v63 }
 0x3ca   :  { %1367 = vmatpush1.bf16.msra.mxu0 %v3499_v55  ;;  %1410 = vmatpush1.bf16.msra.mxu1 %v3502_v14 }
 0x3cb   :  { %1368 = vmatprep.subr.bf16.mxu0 %v3505_v59  ;;  %1411 = vmatprep.subr.bf16.mxu1 %v3508_v34 }
 0x3ce   :  { %1369 = vmatpush1.bf16.msra.mxu0 %v3511_v23  ;;  %1412 = vmatpush1.bf16.msra.mxu1 %v3514_v62 }
 0x3cf   :  { %1370 = vmatprep.subr.bf16.mxu0 %v3517_v49  ;;  %1413 = vmatprep.subr.bf16.mxu1 %v3520_v47 }
 0x3d2   :  { %1371 = vmatpush1.bf16.msra.mxu0 %v3523_v9  ;;  %1414 = vmatpush1.bf16.msra.mxu1 %v3526_v56 }
 0x3d3   :  { %1516 = vmatprep.subr.bf16.mxu0 %v3431_v36  ;;  %1559 = vmatprep.subr.bf16.mxu1 %v3434_v24 }
 0x488   :  { %v1230_v27 = vpop.f32.mrb[28].mxu0  ;;  %v1273_v37 = vpop.f32.mrb[60].mxu1 }
 0x489   :  { %v1282_v29 = vadd.f32 %v1230_v27, %v1188_v3  ;;  %v1284_v42 = vadd.f32 %v1273_v37, %v1190_v25  ;;  %v1232_v43 = vpop.f32.mrb[29].mxu0  ;;  %v1275_v44 = vpop.f32.mrb[61].mxu1 }
 0x48a   :  { %v1283_v8 = vadd.f32 %v1232_v43, %v1189_v38  ;;  %v1285_v61 = vadd.f32 %v1275_v44, %v1191_v40  ;;  %v1234_v10 = vpop.f32.mrb[30].mxu0  ;;  %v1277_v11 = vpop.f32.mrb[62].mxu1 }
 0x48b   :  { %v2281_v57 = vmul.f32 -1.442695, %v1282_v29  ;;  %v1286_v15 = vadd.f32 %v1234_v10, %v1192_v45  ;;  %v1288_v1 = vadd.f32 %v1277_v11, %v1194_v51  ;;  %v1236_v6 = vpop.f32.mrb[31].mxu0  ;;  %v1279_v3 = vpop.f32.mrb[63].mxu1 }
 0x48c   :  { %v2283_v25 = vmul.f32 -1.442695, %v1283_v8  ;;  %v1287_v27 = vadd.f32 %v1236_v6, %v1193_v13  ;;  %v1289_v37 = vadd.f32 %v1279_v3, %v1195_v53  ;;  %v2285_v38 = vmul.f32 -1.442695, %v1285_v61 }
 0x48d   :  { %2549 = vpow2.f32 %v2281_v57  ;;  %v2282_v54 = vmul.f32 -1.442695, %v1286_v15 }
 0x48e   :  { %2551 = vpow2.f32 %v2283_v25  ;;  %v2284_v5 = vmul.f32 -1.442695, %v1287_v27  ;;  %v2286_v39 = vmul.f32 -1.442695, %v1289_v37 }
 0x48f   :  { %2553 = vpow2.f32 %v2282_v54 }
 0x490   :  { %2555 = vpow2.f32 %v2284_v5 }
 0x491   :  { %2557 = vtanh.f32 %v1284_v42 }
 0x492   :  { %2559 = vpow2.f32 %v2285_v38 }
 0x493   :  { %2561 = vtanh.f32 %v1288_v1 }
 0x497   :  { %v2550_v40 = vpop.eup %2549 }
 0x498   :  { %v2552_v28 = vpop.eup %2551  ;;  %v1296_v43 = vadd.f32 1.0, %v2550_v40 }
 0x499   :  { %v1308_v29 = vadd.f32 1.0, %v2552_v28  ;;  %v2554_v44 = vpop.eup %2553 }
 0x49a   :  { %2563 = vrcp.f32 %v1296_v43  ;;  %v1297_v6 = vadd.f32 1.0, %v2554_v44  ;;  %v2556_v53 = vpop.eup %2555 }
 0x49b   :  { %2565 = vrcp.f32 %v1308_v29  ;;  %v1309_v57 = vadd.f32 1.0, %v2556_v53  ;;  %v2558_v15 = vpop.eup %2557 }
 0x49c   :  { %2567 = vpow2.f32 %v2286_v39  ;;  %v2560_v45 = vpop.eup %2559 }
 0x49d   :  { %2569 = vrcp.f32 %v1297_v6  ;;  %v2562_v51 = vpop.eup %2561  ;;  %v1322_v1 = vadd.f32 1.0, %v2560_v45  ;;  %v1350_v6 = vunpack.c.l.bf16 %v3283_v26 }
 0x49e   :  { %2571 = vrcp.f32 %v1309_v57 }
 0x49f   :  { %2573 = vrcp.f32 %v1322_v1 }
 0x4a4   :  { %v2564_v8 = vpop.eup %2563 }
 0x4a5   :  { %v2566_v42 = vpop.eup %2565  ;;  %v1330_v61 = vmul.f32 %v2564_v8, %v2558_v15  ;;  %v3821_v15 = vld [vmem:[#allocation20_spill] sm:$0xff] }
 0x4a6   :  { %v2568_v10 = vpop.eup %2567  ;;  %v1328_v11 = vmul.f32 %v2566_v42, %v3446_v41  ;;  %v1349_v45 = vunpack.c.l.bf16 %v3821_v15 }
 0x4a7   :  { %v2570_v13 = vpop.eup %2569  ;;  %v1323_v37 = vadd.f32 1.0, %v2568_v10 }
 0x4a8   :  { %v3540_v3 = vadd.f32 %v1330_v61, %v1328_v11  ;;  %v1331_v25 = vmul.f32 %v2570_v13, %v2562_v51  ;;  %v2572_v27 = vpop.eup %2571  ;;  %v1351_v51 = vunpack.c.l.bf16 %v3285_v48  ;;  %v1354_v13 = vunpack.c.h.bf16 %v3283_v26 }
 0x4a9   :  { %v1329_v54 = vmul.f32 %v2572_v27, %v3450_v58  ;;  %v2574_v38 = vpop.eup %2573  ;;  %v3820_v58 = vld [vmem:[#allocation19_spill] sm:$0xff] }
 0x4aa   :  { %2575 = vtanh.f32 %v3540_v3  ;;  %v1348_v44 = vunpack.c.l.bf16 %v3820_v58  ;;  %v1352_v11 = vunpack.c.h.bf16 %v3820_v58 }
 0x4ab   :  { %v3544_v5 = vadd.f32 %v1331_v25, %v1329_v54  ;;  %2577 = vrcp.f32 %v1323_v37  ;;  %v1353_v54 = vunpack.c.h.bf16 %v3821_v15 }
 0x4ad   :  { %2579 = vtanh.f32 %v3544_v5 }
 0x4b4   :  { %v2576_v40 = vpop.eup %2575 }
 0x4b5   :  { %v2578_v41 = vpop.eup %2577  ;;  %v1336_v43 = vmul.f32 %v2576_v40, %v2574_v38  ;;  %v1355_v38 = vunpack.c.h.bf16 %v3285_v48 }
 0x4b7   :  { %v2580_v28 = vpop.eup %2579 }
 0x4b8   :  { %v1337_v39 = vmul.f32 %v2580_v28, %v2578_v41 }
 0x4ba   :  { %v3547_v29 = vpack.c.bf16 %v1337_v39, %v1336_v43 }
 0x4bc   :  { %1389 = vmatmul.mubr.bf16.vlgmr.msra.gmra.mrb[32].mxu0 %v3547_v29  ;;  %1432 = vmatmul.mubr.bf16.vlgmr.msra.gmra.mrb[64].mxu1 %v3547_v29 }
 0x4bd   :  { %1517 = vmatpush1.bf16.msra.mxu0 %v3379_v2  ;;  %1560 = vmatpush1.bf16.msra.mxu1 %v3458_v17 }
 0x4be   :  { %1518 = vmatprep.subr.bf16.mxu0 %v3383_v52  ;;  %1561 = vmatprep.subr.bf16.mxu1 %v3462_v16 }
 0x4bf   :  { %1548 = vmatprep.mubr.bf16.mxu0 %v3811_v60  ;;  %1591 = vmatprep.mubr.bf16.mxu1 %v3811_v60 }
 0x4c1   :  { %1519 = vmatpush1.bf16.msra.mxu0 %v3389_v20  ;;  %1562 = vmatpush1.bf16.msra.mxu1 %v3468_v18 }
 0x4c2   :  { %1520 = vmatprep.subr.bf16.mxu0 %v3393_v0  ;;  %1563 = vmatprep.subr.bf16.mxu1 %v3472_v21 }
 0x4c5   :  { %1521 = vmatpush1.bf16.msra.mxu0 %v3397_v30  ;;  %1564 = vmatpush1.bf16.msra.mxu1 %v3476_v22 }
 0x4c6   :  { %1522 = vmatprep.subr.bf16.mxu0 %v3401_v31  ;;  %1565 = vmatprep.subr.bf16.mxu1 %v3480_v19 }
 0x4c9   :  { %1523 = vmatpush1.bf16.msra.mxu0 %v3405_v4  ;;  %1566 = vmatpush1.bf16.msra.mxu1 %v3484_v12 }
 0x4ca   :  { %1524 = vmatprep.subr.bf16.mxu0 %v3409_v32  ;;  %1567 = vmatprep.subr.bf16.mxu1 %v3488_v7 }
 0x4cd   :  { %1525 = vmatpush1.bf16.msra.mxu0 %v3413_v33  ;;  %1568 = vmatpush1.bf16.msra.mxu1 %v3492_v50 }
 0x4ce   :  { %1526 = vmatprep.subr.bf16.mxu0 %v3417_v35  ;;  %1569 = vmatprep.subr.bf16.mxu1 %v3496_v63 }
 0x4d1   :  { %1527 = vmatpush1.bf16.msra.mxu0 %v3499_v55  ;;  %1570 = vmatpush1.bf16.msra.mxu1 %v3502_v14 }
 0x4d2   :  { %1528 = vmatprep.subr.bf16.mxu0 %v3505_v59  ;;  %1571 = vmatprep.subr.bf16.mxu1 %v3508_v34 }
 0x4d5   :  { %1529 = vmatpush1.bf16.msra.mxu0 %v3511_v23  ;;  %1572 = vmatpush1.bf16.msra.mxu1 %v3514_v62 }
 0x4d6   :  { %1530 = vmatprep.subr.bf16.mxu0 %v3517_v49  ;;  %1573 = vmatprep.subr.bf16.mxu1 %v3520_v47 }
 0x4d9   :  { %1531 = vmatpush1.bf16.msra.mxu0 %v3523_v9  ;;  %1574 = vmatpush1.bf16.msra.mxu1 %v3526_v56 }
 0x4da   :  { %1676 = vmatprep.subr.bf16.mxu0 %v3431_v36  ;;  %1719 = vmatprep.subr.bf16.mxu1 %v3434_v24 }
 0x58f   :  { %v1390_v53 = vpop.f32.mrb[32].mxu0  ;;  %v1433_v57 = vpop.f32.mrb[64].mxu1 }
 0x590   :  { %v1442_v8 = vadd.f32 %v1390_v53, %v1348_v44  ;;  %v1444_v42 = vadd.f32 %v1433_v57, %v1350_v6  ;;  %v1392_v61 = vpop.f32.mrb[33].mxu0  ;;  %v1435_v10 = vpop.f32.mrb[65].mxu1 }
 0x591   :  { %v1443_v1 = vadd.f32 %v1392_v61, %v1349_v45  ;;  %v1445_v25 = vadd.f32 %v1435_v10, %v1351_v51  ;;  %v1394_v27 = vpop.f32.mrb[34].mxu0  ;;  %v1437_v37 = vpop.f32.mrb[66].mxu1 }
 0x592   :  { %v2287_v40 = vmul.f32 -1.442695, %v1442_v8  ;;  %v1446_v41 = vadd.f32 %v1394_v27, %v1352_v11  ;;  %v1448_v28 = vadd.f32 %v1437_v37, %v1354_v13  ;;  %v1396_v43 = vpop.f32.mrb[35].mxu0  ;;  %v1439_v39 = vpop.f32.mrb[67].mxu1 }
 0x593   :  { %v2289_v44 = vmul.f32 -1.442695, %v1443_v1  ;;  %v1447_v6 = vadd.f32 %v1396_v43, %v1353_v54  ;;  %v1449_v53 = vadd.f32 %v1439_v39, %v1355_v38  ;;  %v2291_v57 = vmul.f32 -1.442695, %v1445_v25 }
 0x594   :  { %2581 = vpow2.f32 %v2287_v40  ;;  %v2288_v58 = vmul.f32 -1.442695, %v1446_v41 }
 0x595   :  { %2583 = vpow2.f32 %v2289_v44  ;;  %v2290_v26 = vmul.f32 -1.442695, %v1447_v6  ;;  %v2292_v48 = vmul.f32 -1.442695, %v1449_v53 }
 0x596   :  { %2585 = vpow2.f32 %v2288_v58 }
 0x597   :  { %2587 = vpow2.f32 %v2290_v26 }
 0x598   :  { %2589 = vtanh.f32 %v1444_v42 }
 0x599   :  { %2591 = vpow2.f32 %v2291_v57 }
 0x59a   :  { %2593 = vtanh.f32 %v1448_v28 }
 0x59e   :  { %v2582_v45 = vpop.eup %2581 }
 0x59f   :  { %v2584_v15 = vpop.eup %2583  ;;  %v1456_v51 = vadd.f32 1.0, %v2582_v45 }
 0x5a0   :  { %v1468_v8 = vadd.f32 1.0, %v2584_v15  ;;  %v2586_v61 = vpop.eup %2585 }
 0x5a1   :  { %2595 = vrcp.f32 %v1456_v51  ;;  %v1457_v10 = vadd.f32 1.0, %v2586_v61  ;;  %v2588_v11 = vpop.eup %2587  ;;  %v1510_v61 = vunpack.c.l.bf16 %v3291_v46 }
 0x5a2   :  { %2597 = vrcp.f32 %v1468_v8  ;;  %v1469_v13 = vadd.f32 1.0, %v2588_v11  ;;  %v2590_v1 = vpop.eup %2589 }
 0x5a3   :  { %2599 = vpow2.f32 %v2292_v48  ;;  %v2592_v27 = vpop.eup %2591 }
 0x5a4   :  { %2601 = vrcp.f32 %v1457_v10  ;;  %v2594_v25 = vpop.eup %2593  ;;  %v1482_v28 = vadd.f32 1.0, %v2592_v27  ;;  %v3824_v27 = vld [vmem:[#allocation33_spill] sm:$0xff] }
 0x5a5   :  { %2603 = vrcp.f32 %v1469_v13  ;;  %v3823_v13 = vld [vmem:[#allocation22_spill] sm:$0xff] }
 0x5a6   :  { %2605 = vrcp.f32 %v1482_v28 }
 0x5ab   :  { %v2596_v37 = vpop.eup %2595 }
 0x5ac   :  { %v2598_v42 = vpop.eup %2597  ;;  %v1490_v54 = vmul.f32 %v2596_v37, %v2590_v1  ;;  %v1509_v1 = vunpack.c.l.bf16 %v3823_v13 }
 0x5ad   :  { %v2600_v38 = vpop.eup %2599  ;;  %v1488_v40 = vmul.f32 %v2598_v42, %v3540_v3 }
 0x5ae   :  { %v2602_v41 = vpop.eup %2601  ;;  %v1483_v6 = vadd.f32 1.0, %v2600_v38 }
 0x5af   :  { %v3594_v43 = vadd.f32 %v1490_v54, %v1488_v40  ;;  %v1491_v39 = vmul.f32 %v2602_v41, %v2594_v25  ;;  %v2604_v44 = vpop.eup %2603  ;;  %v1511_v25 = vunpack.c.l.bf16 %v3824_v27 }
 0x5b0   :  { %v1489_v53 = vmul.f32 %v2604_v44, %v3544_v5  ;;  %v2606_v26 = vpop.eup %2605  ;;  %v3822_v5 = vld [vmem:[#allocation21_spill] sm:$0xff]  ;;  %v1513_v44 = vunpack.c.h.bf16 %v3823_v13 }
 0x5b1   :  { %2607 = vtanh.f32 %v3594_v43  ;;  %v1508_v8 = vunpack.c.l.bf16 %v3822_v5  ;;  %v1512_v40 = vunpack.c.h.bf16 %v3822_v5 }
 0x5b2   :  { %v3598_v58 = vadd.f32 %v1491_v39, %v1489_v53  ;;  %2609 = vrcp.f32 %v1483_v6  ;;  %v1515_v6 = vunpack.c.h.bf16 %v3824_v27 }
 0x5b4   :  { %2611 = vtanh.f32 %v3598_v58 }
 0x5bb   :  { %v2608_v57 = vpop.eup %2607 }
 0x5bc   :  { %v2610_v3 = vpop.eup %2609  ;;  %v1496_v15 = vmul.f32 %v2608_v57, %v2606_v26 }
 0x5be   :  { %v2612_v45 = vpop.eup %2611 }
 0x5bf   :  { %v1497_v51 = vmul.f32 %v2612_v45, %v2610_v3 }
 0x5c1   :  { %v3601_v48 = vpack.c.bf16 %v1497_v51, %v1496_v15 }
 0x5c3   :  { %1549 = vmatmul.mubr.bf16.vlgmr.msra.gmra.mrb[36].mxu0 %v3601_v48  ;;  %1592 = vmatmul.mubr.bf16.vlgmr.msra.gmra.mrb[68].mxu1 %v3601_v48 }
 0x5c4   :  { %1677 = vmatpush1.bf16.msra.mxu0 %v3379_v2  ;;  %1720 = vmatpush1.bf16.msra.mxu1 %v3458_v17 }
 0x5c5   :  { %1678 = vmatprep.subr.bf16.mxu0 %v3383_v52  ;;  %1721 = vmatprep.subr.bf16.mxu1 %v3462_v16 }
 0x5c6   :  { %1708 = vmatprep.mubr.bf16.mxu0 %v3811_v60  ;;  %1751 = vmatprep.mubr.bf16.mxu1 %v3811_v60 }
 0x5c8   :  { %1679 = vmatpush1.bf16.msra.mxu0 %v3389_v20  ;;  %1722 = vmatpush1.bf16.msra.mxu1 %v3468_v18 }
 0x5c9   :  { %1680 = vmatprep.subr.bf16.mxu0 %v3393_v0  ;;  %1723 = vmatprep.subr.bf16.mxu1 %v3472_v21 }
 0x5cc   :  { %1681 = vmatpush1.bf16.msra.mxu0 %v3397_v30  ;;  %1724 = vmatpush1.bf16.msra.mxu1 %v3476_v22 }
 0x5cd   :  { %1682 = vmatprep.subr.bf16.mxu0 %v3401_v31  ;;  %1725 = vmatprep.subr.bf16.mxu1 %v3480_v19 }
 0x5d0   :  { %1683 = vmatpush1.bf16.msra.mxu0 %v3405_v4  ;;  %1726 = vmatpush1.bf16.msra.mxu1 %v3484_v12 }
 0x5d1   :  { %1684 = vmatprep.subr.bf16.mxu0 %v3409_v32  ;;  %1727 = vmatprep.subr.bf16.mxu1 %v3488_v7 }
 0x5d4   :  { %1685 = vmatpush1.bf16.msra.mxu0 %v3413_v33  ;;  %1728 = vmatpush1.bf16.msra.mxu1 %v3492_v50 }
 0x5d5   :  { %1686 = vmatprep.subr.bf16.mxu0 %v3417_v35  ;;  %1729 = vmatprep.subr.bf16.mxu1 %v3496_v63 }
 0x5d8   :  { %1687 = vmatpush1.bf16.msra.mxu0 %v3499_v55  ;;  %1730 = vmatpush1.bf16.msra.mxu1 %v3502_v14 }
 0x5d9   :  { %1688 = vmatprep.subr.bf16.mxu0 %v3505_v59  ;;  %1731 = vmatprep.subr.bf16.mxu1 %v3508_v34 }
 0x5dc   :  { %1689 = vmatpush1.bf16.msra.mxu0 %v3511_v23  ;;  %1732 = vmatpush1.bf16.msra.mxu1 %v3514_v62 }
 0x5dd   :  { %1690 = vmatprep.subr.bf16.mxu0 %v3517_v49  ;;  %1733 = vmatprep.subr.bf16.mxu1 %v3520_v47 }
 0x5e0   :  { %1691 = vmatpush1.bf16.msra.mxu0 %v3523_v9  ;;  %1734 = vmatpush1.bf16.msra.mxu1 %v3526_v56 }
 0x5e1   :  { %1836 = vmatprep.subr.bf16.mxu0 %v3431_v36  ;;  %1879 = vmatprep.subr.bf16.mxu1 %v3434_v24  ;;  %v1514_v36 = vunpack.c.h.bf16 %v3291_v46 }
 0x696   :  { %v1550_v10 = vpop.f32.mrb[36].mxu0  ;;  %v1593_v11 = vpop.f32.mrb[68].mxu1 }
 0x697   :  { %v1602_v37 = vadd.f32 %v1550_v10, %v1508_v8  ;;  %v1604_v42 = vadd.f32 %v1593_v11, %v1510_v61  ;;  %v1552_v54 = vpop.f32.mrb[37].mxu0  ;;  %v1595_v38 = vpop.f32.mrb[69].mxu1 }
 0x698   :  { %v1603_v41 = vadd.f32 %v1552_v54, %v1509_v1  ;;  %v1605_v24 = vadd.f32 %v1595_v38, %v1511_v25  ;;  %v1554_v28 = vpop.f32.mrb[38].mxu0  ;;  %v1597_v39 = vpop.f32.mrb[70].mxu1 }
 0x699   :  { %v2293_v53 = vmul.f32 -1.442695, %v1602_v37  ;;  %v1606_v26 = vadd.f32 %v1554_v28, %v1512_v40  ;;  %v1608_v57 = vadd.f32 %v1597_v39, %v1514_v36  ;;  %v1556_v3 = vpop.f32.mrb[39].mxu0  ;;  %v1599_v45 = vpop.f32.mrb[71].mxu1 }
 0x69a   :  { %v2295_v15 = vmul.f32 -1.442695, %v1603_v41  ;;  %v1607_v51 = vadd.f32 %v1556_v3, %v1513_v44  ;;  %v1609_v8 = vadd.f32 %v1599_v45, %v1515_v6  ;;  %v2297_v61 = vmul.f32 -1.442695, %v1605_v24 }
 0x69b   :  { %2613 = vpow2.f32 %v2293_v53  ;;  %v2294_v5 = vmul.f32 -1.442695, %v1606_v26 }
 0x69c   :  { %2615 = vpow2.f32 %v2295_v15  ;;  %v2296_v46 = vmul.f32 -1.442695, %v1607_v51  ;;  %v2298_v1 = vmul.f32 -1.442695, %v1609_v8 }
 0x69d   :  { %2617 = vpow2.f32 %v2294_v5 }
 0x69e   :  { %2619 = vpow2.f32 %v2296_v46 }
 0x69f   :  { %2621 = vtanh.f32 %v1604_v42 }
 0x6a0   :  { %2623 = vpow2.f32 %v2297_v61 }
 0x6a1   :  { %2625 = vtanh.f32 %v1608_v57 }
 0x6a5   :  { %v2614_v10 = vpop.eup %2613 }
 0x6a6   :  { %v2616_v11 = vpop.eup %2615  ;;  %v1616_v13 = vadd.f32 1.0, %v2614_v10 }
 0x6a7   :  { %v1628_v27 = vadd.f32 1.0, %v2616_v11  ;;  %v2618_v25 = vpop.eup %2617 }
 0x6a8   :  { %2627 = vrcp.f32 %v1616_v13  ;;  %v1617_v37 = vadd.f32 1.0, %v2618_v25  ;;  %v2620_v54 = vpop.eup %2619 }
 0x6a9   :  { %2629 = vrcp.f32 %v1628_v27  ;;  %v1629_v38 = vadd.f32 1.0, %v2620_v54  ;;  %v2622_v40 = vpop.eup %2621 }
 0x6aa   :  { %2631 = vpow2.f32 %v2298_v1  ;;  %v2624_v36 = vpop.eup %2623 }
 0x6ab   :  { %2633 = vrcp.f32 %v1617_v37  ;;  %v2626_v41 = vpop.eup %2625  ;;  %v1642_v53 = vadd.f32 1.0, %v2624_v36 }
 0x6ac   :  { %2635 = vrcp.f32 %v1629_v38 }
 0x6ad   :  { %2637 = vrcp.f32 %v1642_v53 }
 0x6b2   :  { %v2628_v24 = vpop.eup %2627 }
 0x6b3   :  { %v2630_v42 = vpop.eup %2629  ;;  %v1650_v28 = vmul.f32 %v2628_v24, %v2622_v40 }
 0x6b4   :  { %v2632_v39 = vpop.eup %2631  ;;  %v1648_v44 = vmul.f32 %v2630_v42, %v3594_v43 }
 0x6b5   :  { %v2634_v6 = vpop.eup %2633  ;;  %v1643_v45 = vadd.f32 1.0, %v2632_v39 }
 0x6b6   :  { %v3648_v26 = vadd.f32 %v1650_v28, %v1648_v44  ;;  %v1651_v57 = vmul.f32 %v2634_v6, %v2626_v41  ;;  %v2636_v3 = vpop.eup %2635 }
 0x6b7   :  { %v1649_v15 = vmul.f32 %v2636_v3, %v3598_v58  ;;  %v2638_v8 = vpop.eup %2637 }
 0x6b8   :  { %2639 = vtanh.f32 %v3648_v26 }
 0x6b9   :  { %v3652_v51 = vadd.f32 %v1651_v57, %v1649_v15  ;;  %2641 = vrcp.f32 %v1643_v45 }
 0x6bb   :  { %2643 = vtanh.f32 %v3652_v51 }
 0x6c2   :  { %v2640_v5 = vpop.eup %2639 }
 0x6c3   :  { %v2642_v43 = vpop.eup %2641  ;;  %v1656_v61 = vmul.f32 %v2640_v5, %v2638_v8 }
 0x6c5   :  { %v2644_v46 = vpop.eup %2643 }
 0x6c6   :  { %v1657_v10 = vmul.f32 %v2644_v46, %v2642_v43 }
 0x6c8   :  { %v3655_v11 = vpack.c.bf16 %v1657_v10, %v1656_v61 }
 0x6ca   :  { %1709 = vmatmul.mubr.bf16.vlgmr.msra.gmra.mrb[40].mxu0 %v3655_v11  ;;  %1752 = vmatmul.mubr.bf16.vlgmr.msra.gmra.mrb[72].mxu1 %v3655_v11 }
 0x6cb   :  { %1837 = vmatpush1.bf16.msra.mxu0 %v3379_v2  ;;  %1880 = vmatpush1.bf16.msra.mxu1 %v3458_v17  ;;  %v3825_v2 = vld [vmem:[#allocation23_spill] sm:$0xff] }
 0x6cc   :  { %1838 = vmatprep.subr.bf16.mxu0 %v3383_v52  ;;  %1881 = vmatprep.subr.bf16.mxu1 %v3462_v16  ;;  %v1668_v52 = vunpack.c.l.bf16 %v3825_v2 }
 0x6cd   :  { %1868 = vmatprep.mubr.bf16.mxu0 %v3811_v60  ;;  %1911 = vmatprep.mubr.bf16.mxu1 %v3811_v60  ;;  %v3691_v60 = vld [vmem:[#allocation12] sm:$0xff]  }
 0x6cf   :  { %1839 = vmatpush1.bf16.msra.mxu0 %v3389_v20  ;;  %1882 = vmatpush1.bf16.msra.mxu1 %v3468_v18  ;;  %v3826_v20 = vld [vmem:[#allocation34_spill] sm:$0xff] }
 0x6d0   :  { %1840 = vmatprep.subr.bf16.mxu0 %v3393_v0  ;;  %1883 = vmatprep.subr.bf16.mxu1 %v3472_v21  ;;  %v1670_v0 = vunpack.c.l.bf16 %v3826_v20 }
 0x6d3   :  { %1841 = vmatpush1.bf16.msra.mxu0 %v3397_v30  ;;  %1884 = vmatpush1.bf16.msra.mxu1 %v3476_v22  ;;  %v1672_v22 = vunpack.c.h.bf16 %v3825_v2 }
 0x6d4   :  { %1842 = vmatprep.subr.bf16.mxu0 %v3401_v31  ;;  %1885 = vmatprep.subr.bf16.mxu1 %v3480_v19  ;;  %v1674_v19 = vunpack.c.h.bf16 %v3826_v20 }
 0x6d7   :  { %1843 = vmatpush1.bf16.msra.mxu0 %v3405_v4  ;;  %1886 = vmatpush1.bf16.msra.mxu1 %v3484_v12  ;;  %v3827_v4 = vld [vmem:[#allocation24_spill] sm:$0xff] }
 0x6d8   :  { %1844 = vmatprep.subr.bf16.mxu0 %v3409_v32  ;;  %1887 = vmatprep.subr.bf16.mxu1 %v3488_v7  ;;  %v1669_v32 = vunpack.c.l.bf16 %v3827_v4 }
 0x6db   :  { %1845 = vmatpush1.bf16.msra.mxu0 %v3413_v33  ;;  %1888 = vmatpush1.bf16.msra.mxu1 %v3492_v50  ;;  %v3828_v33 = vld [vmem:[#allocation35_spill] sm:$0xff] }
 0x6dc   :  { %1846 = vmatprep.subr.bf16.mxu0 %v3417_v35  ;;  %1889 = vmatprep.subr.bf16.mxu1 %v3496_v63  ;;  %v1671_v35 = vunpack.c.l.bf16 %v3828_v33 }
 0x6df   :  { %1847 = vmatpush1.bf16.msra.mxu0 %v3499_v55  ;;  %1890 = vmatpush1.bf16.msra.mxu1 %v3502_v14  ;;  %v1673_v55 = vunpack.c.h.bf16 %v3827_v4  ;;  %v1675_v14 = vunpack.c.h.bf16 %v3828_v33  ;;  %v2446_v4 = vld [vmem:[#allocation12 + $0x8] sm:$0xff]   ;;  %v2448_v33 = vld [vmem:[#allocation12 + $0x18] sm:$0xff]  }
 0x6e0   :  { %1848 = vmatprep.subr.bf16.mxu0 %v3505_v59  ;;  %1891 = vmatprep.subr.bf16.mxu1 %v3508_v34 }
 0x6e3   :  { %1849 = vmatpush1.bf16.msra.mxu0 %v3511_v23  ;;  %1892 = vmatpush1.bf16.msra.mxu1 %v3514_v62 }
 0x6e4   :  { %1850 = vmatprep.subr.bf16.mxu0 %v3517_v49  ;;  %1893 = vmatprep.subr.bf16.mxu1 %v3520_v47 }
 0x6e7   :  { %1851 = vmatpush1.bf16.msra.mxu0 %v3523_v9  ;;  %1894 = vmatpush1.bf16.msra.mxu1 %v3526_v56 }
 0x6e8   :  { %2336 = vmatprep.subr.bf16.mxu0 %v3691_v60 }
 0x79d   :  { %v1710_v30 = vpop.f32.mrb[40].mxu0  ;;  %v1753_v31 = vpop.f32.mrb[72].mxu1 }
 0x79e   :  { %v1762_v17 = vadd.f32 %v1710_v30, %v1668_v52  ;;  %v1764_v16 = vadd.f32 %v1753_v31, %v1670_v0  ;;  %v1712_v18 = vpop.f32.mrb[41].mxu0  ;;  %v1755_v21 = vpop.f32.mrb[73].mxu1 }
 0x79f   :  { %v1763_v12 = vadd.f32 %v1712_v18, %v1669_v32  ;;  %v1765_v7 = vadd.f32 %v1755_v21, %v1671_v35  ;;  %v1714_v50 = vpop.f32.mrb[42].mxu0  ;;  %v1757_v63 = vpop.f32.mrb[74].mxu1  ;;  %v2447_v32 = vld [vmem:[#allocation12 + $0x10] sm:$0xff]   ;;  %v2449_v35 = vld [vmem:[#allocation12 + $0x20] sm:$0xff]   ;;  %v2452_v18 = vld [vmem:[#allocation12 + $0x38] sm:$0xff]  }
 0x7a0   :  { %v2299_v59 = vmul.f32 -1.442695, %v1762_v17  ;;  %v1766_v34 = vadd.f32 %v1714_v50, %v1672_v22  ;;  %v1768_v23 = vadd.f32 %v1757_v63, %v1674_v19  ;;  %v1716_v62 = vpop.f32.mrb[43].mxu0  ;;  %v1759_v49 = vpop.f32.mrb[75].mxu1  ;;  %v2450_v17 = vld [vmem:[#allocation12 + $0x28] sm:$0xff]   ;;  %v3831_v21 = vld [vmem:[#allocation25_spill] sm:$0xff] }
 0x7a1   :  { %v2301_v47 = vmul.f32 -1.442695, %v1763_v12  ;;  %v1767_v9 = vadd.f32 %v1716_v62, %v1673_v55  ;;  %v1769_v56 = vadd.f32 %v1759_v49, %v1675_v14  ;;  %v2303_v1 = vmul.f32 -1.442695, %v1765_v7  ;;  %v3832_v22 = vld [vmem:[#allocation26_spill] sm:$0xff]  ;;  %v3833_v12 = vld [vmem:[#allocation36_spill] sm:$0xff] }
 0x7a2   :  { %2645 = vpow2.f32 %v2299_v59  ;;  %v2300_v58 = vmul.f32 -1.442695, %v1766_v34  ;;  %v1828_v19 = vunpack.c.l.bf16 %v3832_v22  ;;  %v1830_v7 = vunpack.c.l.bf16 %v3833_v12  ;;  %v3834_v55 = vld [vmem:[#allocation27_spill] sm:$0xff]  ;;  %v3835_v59 = vld [vmem:[#allocation37_spill] sm:$0xff] }
 0x7a3   :  { %2647 = vpow2.f32 %v2301_v47  ;;  %v2302_v13 = vmul.f32 -1.442695, %v1767_v9  ;;  %v2304_v54 = vmul.f32 -1.442695, %v1769_v56  ;;  %v1829_v14 = vunpack.c.l.bf16 %v3834_v55 }
 0x7a4   :  { %2649 = vpow2.f32 %v2300_v58  ;;  %v1831_v34 = vunpack.c.l.bf16 %v3835_v59 }
 0x7a5   :  { %2651 = vpow2.f32 %v2302_v13  ;;  %v1833_v13 = vunpack.c.h.bf16 %v3834_v55 }
 0x7a6   :  { %2653 = vtanh.f32 %v1764_v16  ;;  %v2451_v16 = vld [vmem:[#allocation12 + $0x30] sm:$0xff]  }
 0x7a7   :  { %2655 = vpow2.f32 %v2303_v1  ;;  %v1835_v1 = vunpack.c.h.bf16 %v3835_v59 }
 0x7a8   :  { %2657 = vtanh.f32 %v1768_v23 }
 0x7ac   :  { %v2646_v27 = vpop.eup %2645 }
 0x7ad   :  { %v2648_v25 = vpop.eup %2647  ;;  %v1776_v37 = vadd.f32 1.0, %v2646_v27 }
 0x7ae   :  { %v1788_v38 = vadd.f32 1.0, %v2648_v25  ;;  %v2650_v40 = vpop.eup %2649 }
 0x7af   :  { %2659 = vrcp.f32 %v1776_v37  ;;  %v1777_v36 = vadd.f32 1.0, %v2650_v40  ;;  %v2652_v41 = vpop.eup %2651 }
 0x7b0   :  { %2661 = vrcp.f32 %v1788_v38  ;;  %v1789_v24 = vadd.f32 1.0, %v2652_v41  ;;  %v2654_v42 = vpop.eup %2653 }
 0x7b1   :  { %2663 = vpow2.f32 %v2304_v54  ;;  %v2656_v28 = vpop.eup %2655 }
 0x7b2   :  { %2665 = vrcp.f32 %v1777_v36  ;;  %v2658_v39 = vpop.eup %2657  ;;  %v1802_v15 = vadd.f32 1.0, %v2656_v28 }
 0x7b3   :  { %2667 = vrcp.f32 %v1789_v24 }
 0x7b4   :  { %2669 = vrcp.f32 %v1802_v15 }
 0x7b9   :  { %v2660_v44 = vpop.eup %2659 }
 0x7ba   :  { %v2662_v6 = vpop.eup %2661  ;;  %v1810_v53 = vmul.f32 %v2660_v44, %v2654_v42 }
 0x7bb   :  { %v2664_v57 = vpop.eup %2663  ;;  %v1808_v3 = vmul.f32 %v2662_v6, %v3648_v26 }
 0x7bc   :  { %v2666_v45 = vpop.eup %2665  ;;  %v1803_v46 = vadd.f32 1.0, %v2664_v57 }
 0x7bd   :  { %v3703_v8 = vadd.f32 %v1810_v53, %v1808_v3  ;;  %v1811_v5 = vmul.f32 %v2666_v45, %v2658_v39  ;;  %v2668_v43 = vpop.eup %2667 }
 0x7be   :  { %v1809_v61 = vmul.f32 %v2668_v43, %v3652_v51  ;;  %v2670_v2 = vpop.eup %2669  ;;  %v3829_v51 = vld [vmem:[#allocation38_spill] sm:$0xff] }
 0x7bf   :  { %2671 = vtanh.f32 %v3703_v8 }
 0x7c0   :  { %v3707_v10 = vadd.f32 %v1811_v5, %v1809_v61  ;;  %2673 = vrcp.f32 %v1803_v46 }
 0x7c2   :  { %2675 = vtanh.f32 %v3707_v10 }
 0x7c9   :  { %v2672_v52 = vpop.eup %2671 }
 0x7ca   :  { %v2674_v26 = vpop.eup %2673  ;;  %v1816_v0 = vmul.f32 %v2672_v52, %v2670_v2 }
 0x7cc   :  { %v2676_v20 = vpop.eup %2675 }
 0x7cd   :  { %v1817_v30 = vmul.f32 %v2676_v20, %v2674_v26 }
 0x7cf   :  { %v1818_v31 = vpack.c.bf16 %v1817_v30, %v1816_v0 }
 0x7d1   :  { %1869 = vmatmul.mubr.bf16.vlgmr.msra.gmra.mrb[44].mxu0 %v1818_v31  ;;  %1912 = vmatmul.mubr.bf16.vlgmr.msra.gmra.mrb[76].mxu1 %v1818_v31 }
 0x7d2   :  { %2337 = vmatpush3.bf16.msra.mxu0 %v3691_v60  ;;  %2352 = vmatprep.mubr.bf16.mxu0 %v3829_v51  ;;  %v3830_v60 = vld [vmem:[#allocation39_spill] sm:$0xff] }
 0x7d3   :  { %2338 = vmatprep.subr.bf16.mxu0 %v2446_v4 }
 0x7d6   :  { %2339 = vmatpush3.bf16.msra.mxu0 %v2446_v4 }
 0x7d7   :  { %2340 = vmatprep.subr.bf16.mxu0 %v2447_v32 }
 0x7da   :  { %2341 = vmatpush3.bf16.msra.mxu0 %v2447_v32 }
 0x7db   :  { %2342 = vmatprep.subr.bf16.mxu0 %v2448_v33 }
 0x7de   :  { %2343 = vmatpush3.bf16.msra.mxu0 %v2448_v33 }
 0x7df   :  { %2344 = vmatprep.subr.bf16.mxu0 %v2449_v35 }
 0x7e2   :  { %2345 = vmatpush3.bf16.msra.mxu0 %v2449_v35 }
 0x7e3   :  { %2346 = vmatprep.subr.bf16.mxu0 %v2450_v17 }
 0x7e6   :  { %2347 = vmatpush3.bf16.msra.mxu0 %v2450_v17 }
 0x7e7   :  { %2348 = vmatprep.subr.bf16.mxu0 %v2451_v16 }
 0x7ea   :  { %2349 = vmatpush3.bf16.msra.mxu0 %v2451_v16 }
 0x7eb   :  { %2350 = vmatprep.subr.bf16.mxu0 %v2452_v18 }
 0x7ee   :  { %2351 = vmatpush3.bf16.msra.mxu0 %v2452_v18 }
 0x7f1   :  { %2353 = vmatmul.mubr.bf16.vlgmr.msra.gmra.mrb[48].mxu0 %v3830_v60 }
 0x7f2   :  { %2356 = vmatprep.mubr.bf16.mxu0 %v3831_v21 }
 0x7f9   :  { %2357 = vmatmul.mubr.bf16.gmra.mrb[52].mxu0 %v3547_v29  ;;  %v1832_v29 = vunpack.c.h.bf16 %v3832_v22 }
 0x7fa   :  { %2360 = vmatprep.mubr.bf16.mxu0 %v3601_v48  ;;  %v1834_v48 = vunpack.c.h.bf16 %v3833_v12 }
 0x801   :  { %2361 = vmatmul.mubr.bf16.gmra.mrb[56].mxu0 %v3655_v11 }
 0x802   :  { %2364 = vmatprep.mubr.bf16.mxu0 %v1818_v31  ;;  %v3729_v31 = vld [vmem:[%s3765_s5] ss:$0 sm:$0xff]  ;;  %s2869_s5 = smov [#allocation14]  }
 0x803   :  { %s2182_s21 = sshll.u32 %s2869_s5, 4  ;;  %s2183_s21 = int_to_ptr.vmem [resolvable:$true] %s2182_s21 }
 0x804   :  { %s2829_s24 = scalar_lea.vmem %s2183_s21, 2048  ;;  %p2834_p5 = scmp.lt.s32.totalorder %s2183_s21, %s2183_s21 }
 0x805   :  { %p2830_p4 = scmp.ne.s32.totalorder %s2183_s21, %s2829_s24  ;;  %p2835_p6 = scmp.lt.s32.totalorder %s2829_s24, %s2829_s24 }
 0x807   :  { %p2836_p7 = por %p2835_p6, %p2834_p5 }
 0x809   :  { %p2837_p8 = pnand %p2836_p7, %p2830_p4 }
 0x8a4   :  { %v1870_v50 = vpop.f32.mrb[44].mxu0  ;;  %v1913_v63 = vpop.f32.mrb[76].mxu1 }
 0x8a5   :  { %v1922_v23 = vadd.f32 %v1870_v50, %v1828_v19  ;;  %v1924_v62 = vadd.f32 %v1913_v63, %v1830_v7  ;;  %v1872_v49 = vpop.f32.mrb[45].mxu0  ;;  %v1915_v47 = vpop.f32.mrb[77].mxu1 }
 0x8a6   :  { %v1923_v11 = vadd.f32 %v1872_v49, %v1829_v14  ;;  %v1925_v9 = vadd.f32 %v1915_v47, %v1831_v34  ;;  %v1874_v56 = vpop.f32.mrb[46].mxu0  ;;  %v1917_v58 = vpop.f32.mrb[78].mxu1 }
 0x8a7   :  { %v2305_v27 = vmul.f32 -1.442695, %v1922_v23  ;;  %v1926_v25 = vadd.f32 %v1874_v56, %v1832_v29  ;;  %v1928_v37 = vadd.f32 %v1917_v58, %v1834_v48  ;;  %v1876_v54 = vpop.f32.mrb[47].mxu0  ;;  %v1919_v38 = vpop.f32.mrb[79].mxu1 }
 0x8a8   :  { %v2307_v40 = vmul.f32 -1.442695, %v1923_v11  ;;  %v1927_v36 = vadd.f32 %v1876_v54, %v1833_v13  ;;  %v1929_v41 = vadd.f32 %v1919_v38, %v1835_v1  ;;  %v2309_v28 = vmul.f32 -1.442695, %v1925_v9 }
 0x8a9   :  { %2677 = vpow2.f32 %v2305_v27  ;;  %v2306_v24 = vmul.f32 -1.442695, %v1926_v25 }
 0x8aa   :  { %2679 = vpow2.f32 %v2307_v40  ;;  %v2308_v42 = vmul.f32 -1.442695, %v1927_v36  ;;  %v2310_v53 = vmul.f32 -1.442695, %v1929_v41 }
 0x8ab   :  { %2681 = vpow2.f32 %v2306_v24 }
 0x8ac   :  { %2683 = vpow2.f32 %v2308_v42 }
 0x8ad   :  { %2685 = vtanh.f32 %v1924_v62 }
 0x8ae   :  { %2687 = vpow2.f32 %v2309_v28 }
 0x8af   :  { %2689 = vtanh.f32 %v1928_v37 }
 0x8b3   :  { %v2678_v39 = vpop.eup %2677 }
 0x8b4   :  { %v2680_v44 = vpop.eup %2679  ;;  %v1936_v6 = vadd.f32 1.0, %v2678_v39 }
 0x8b5   :  { %v1948_v57 = vadd.f32 1.0, %v2680_v44  ;;  %v2682_v3 = vpop.eup %2681 }
 0x8b6   :  { %2691 = vrcp.f32 %v1936_v6  ;;  %v1937_v45 = vadd.f32 1.0, %v2682_v3  ;;  %v2684_v15 = vpop.eup %2683 }
 0x8b7   :  { %2693 = vrcp.f32 %v1948_v57  ;;  %v1949_v5 = vadd.f32 1.0, %v2684_v15  ;;  %v2686_v43 = vpop.eup %2685 }
 0x8b8   :  { %2695 = vpow2.f32 %v2310_v53  ;;  %v2688_v46 = vpop.eup %2687 }
 0x8b9   :  { %2697 = vrcp.f32 %v1937_v45  ;;  %v2690_v61 = vpop.eup %2689  ;;  %v1962_v20 = vadd.f32 1.0, %v2688_v46 }
 0x8ba   :  { %2699 = vrcp.f32 %v1949_v5 }
 0x8bb   :  { %2701 = vrcp.f32 %v1962_v20 }
 0x8c0   :  { %v2692_v2 = vpop.eup %2691 }
 0x8c1   :  { %v2694_v52 = vpop.eup %2693  ;;  %v1970_v26 = vmul.f32 %v2692_v2, %v2686_v43 }
 0x8c2   :  { %v2696_v0 = vpop.eup %2695  ;;  %v1968_v30 = vmul.f32 %v2694_v52, %v3703_v8 }
 0x8c3   :  { %v2698_v4 = vpop.eup %2697  ;;  %v1963_v17 = vadd.f32 1.0, %v2696_v0 }
 0x8c4   :  { %v1971_v51 = vmul.f32 %v2698_v4, %v2690_v61  ;;  %v2354_v32 = vpop.f32.mrb[48].mxu0  ;;  %v1972_v33 = vadd.f32 %v1970_v26, %v1968_v30  ;;  %v2700_v35 = vpop.eup %2699 }
 0x8c5   :  { %v2107_v16 = vadd.f32 %v2354_v32, %v3729_v31  ;;  %v2098_v18 = vpop.f32.mrb[49].mxu0  ;;  %v1969_v60 = vmul.f32 %v2700_v35, %v3707_v10  ;;  %v2702_v59 = vpop.eup %2701 }
 0x8c6   :  { %v2099_v21 = vadd.f32 %v3729_v31, %v2098_v18  ;;  %v2355_v8 = vpop.f32.mrb[50].mxu0  ;;  %2703 = vtanh.f32 %v1972_v33 }
 0x8c7   :  { %2163 = vst [vmem:[#allocation14 + $0x10] sm:$0xff] %v2107_v16  ;;  %v2110_v22 = vadd.f32 %v2355_v8, %v3729_v31  ;;  %v2101_v19 = vpop.f32.mrb[51].mxu0  ;;  %v1973_v7 = vadd.f32 %v1971_v51, %v1969_v60  ;;  %2705 = vrcp.f32 %v1963_v17 }
 0x8c8   :  { %2161 = vst [vmem:[#allocation14] sm:$0xff] %v2099_v21  ;;  %v2102_v12 = vadd.f32 %v3729_v31, %v2101_v19 }
 0x8c9   :  { %2164 = vst [vmem:[#allocation14 + $0x18] sm:$0xff] %v2110_v22  ;;  %2707 = vtanh.f32 %v1973_v7 }
 0x8ca   :  { %2162 = vst [vmem:[#allocation14 + $0x8] sm:$0xff] %v2102_v12 }
 0x8cc   :  { %v2358_v50 = vpop.f32.mrb[52].mxu0 }
 0x8cd   :  { %v2123_v63 = vadd.f32 %v2358_v50, %v3729_v31  ;;  %v2114_v10 = vpop.f32.mrb[53].mxu0 }
 0x8ce   :  { %v2115_v55 = vadd.f32 %v3729_v31, %v2114_v10  ;;  %v2359_v14 = vpop.f32.mrb[54].mxu0 }
 0x8cf   :  { %2167 = vst [vmem:[#allocation14 + $0x30] sm:$0xff] %v2123_v63  ;;  %v2126_v34 = vadd.f32 %v2359_v14, %v3729_v31  ;;  %v2117_v23 = vpop.f32.mrb[55].mxu0 }
 0x8d0   :  { %v2704_v62 = vpop.eup %2703  ;;  %2165 = vst [vmem:[#allocation14 + $0x20] sm:$0xff] %v2115_v55  ;;  %v2118_v49 = vadd.f32 %v3729_v31, %v2117_v23 }
 0x8d1   :  { %2168 = vst [vmem:[#allocation14 + $0x38] sm:$0xff] %v2126_v34  ;;  %v1976_v47 = vmul.f32 %v2704_v62, %v2702_v59  ;;  %v2706_v29 = vpop.eup %2705 }
 0x8d2   :  { %2166 = vst [vmem:[#allocation14 + $0x28] sm:$0xff] %v2118_v49 }
 0x8d3   :  { %v2708_v48 = vpop.eup %2707 }
 0x8d4   :  { %v2362_v11 = vpop.f32.mrb[56].mxu0  ;;  %v1977_v58 = vmul.f32 %v2708_v48, %v2706_v29 }
 0x8d5   :  { %v2139_v9 = vadd.f32 %v2362_v11, %v3729_v31  ;;  %v2130_v56 = vpop.f32.mrb[57].mxu0 }
 0x8d6   :  { %v2131_v13 = vadd.f32 %v3729_v31, %v2130_v56  ;;  %v2363_v1 = vpop.f32.mrb[58].mxu0  ;;  %v1978_v37 = vpack.c.bf16 %v1977_v58, %v1976_v47 }
 0x8d7   :  { %2171 = vst [vmem:[#allocation14 + $0x50] sm:$0xff] %v2139_v9  ;;  %v2142_v27 = vadd.f32 %v2363_v1, %v3729_v31  ;;  %v2133_v25 = vpop.f32.mrb[59].mxu0 }
 0x8d8   :  { %2169 = vst [vmem:[#allocation14 + $0x40] sm:$0xff] %v2131_v13  ;;  %v2134_v54 = vadd.f32 %v3729_v31, %v2133_v25  ;;  %2365 = vmatmul.mubr.bf16.gmra.mrb[60].mxu0 %v1978_v37 }
 0x8d9   :  { %2172 = vst [vmem:[#allocation14 + $0x58] sm:$0xff] %v2142_v27 }
 0x8da   :  { %2170 = vst [vmem:[#allocation14 + $0x48] sm:$0xff] %v2134_v54 }
 0x9ab   :  { %v2366_v38 = vpop.f32.mrb[60].mxu0 }
 0x9ac   :  { %v2155_v40 = vadd.f32 %v2366_v38, %v3729_v31  ;;  %v2146_v36 = vpop.f32.mrb[61].mxu0 }
 0x9ad   :  { %v2147_v41 = vadd.f32 %v3729_v31, %v2146_v36  ;;  %v2367_v24 = vpop.f32.mrb[62].mxu0 }
 0x9ae   :  { %2175 = vst [vmem:[#allocation14 + $0x70] sm:$0xff] %v2155_v40  ;;  %v2158_v42 = vadd.f32 %v2367_v24, %v3729_v31  ;;  %v2149_v28 = vpop.f32.mrb[63].mxu0 }
 0x9af   :  { %2173 = vst [vmem:[#allocation14 + $0x60] sm:$0xff] %v2147_v41  ;;  %v2150_v39 = vadd.f32 %v3729_v31, %v2149_v28 }
 0x9b0   :  { %2176 = vst [vmem:[#allocation14 + $0x78] sm:$0xff] %v2158_v42 }
 0x9b1   :  { %2174 = vst [vmem:[#allocation14 + $0x68] sm:$0xff] %v2150_v39 }
 0x9b2   :  { %2840 = shalt.err (!%p2837_p8)
}
 0x9b3   :  { %s2841_s27 = scalar_lea.hbm %s3766_s6, 2048 }
 0x9b4   :  { %p2842_p9 = scmp.ne.s32.totalorder %s3766_s6, %s2841_s27  ;;  %p2845_p10 = scmp.lt.u32.totalorder %s2841_s27, %s3766_s6 }
 0x9b6   :  { %p2847_p11 = pnand %p2845_p10, %p2842_p9 }
 0x9b8   :  { %2850 = shalt.err (!%p2847_p11)
}
 0x9b9   :  { %s2870_s10 = smov 128   ;;  %s2871_s11 = smov 8  }
 0x9ba   :  { %2188 = dma.vmem_to_hbm [thread:$0]  %s2183_s21, 2048, %s3766_s6, [#allocation8], %s2870_s10, %s2870_s10, %s2871_s11  }
 0x9bb   :  { %2857 = dma.done.wait [#allocation8], 2048  }
 0x9bc   :  { %2858 = vsyncadd [#allocation8], 4294965248 }
 0x9bd   :  { %2192 = vsyncpa [#allocation7], 1 }
 0x9be   :  { %2193 = vsyncpa [#allocation10], 1 }
 0x9bf   :  { %2194 = vsyncpa [#allocation13], 1 }
 0x9c0   :  { %2195 = vsyncpa [#allocation8], 1 }

</bundles_post_ra>
